<compile_context>
chip_gen: v7x
topology: tpu7x:2x2x1
jax: 0.10.0
libtpu: 0.0.40
codegen_flags: <defaults>
</compile_context>

<pallas_src>
import jax
import jax.numpy as jnp
from jax.experimental import pallas as pl
from jax.experimental.pallas import tpu as pltpu


NUM_MID = 6      # six 1x1 Conv2dBlocks after the patchify conv
LANE = 128       # TPU lane width
ROW_MULT = 256   # row-tile granularity (multiple of 8 sublanes / MXU-friendly)


def _round_up(a, b):
    return (a + b - 1) // b * b


def encoder_bn_kernel(x_ref, w0_ref, b0_ref, wm_ref, bm_ref, wf_ref, bf_ref, o_ref):
    # Patchify conv (4x4, stride 4) as matmul + bias + relu.  bf16 operands,
    # f32 accumulation on the MXU.
    h = jnp.dot(x_ref[...], w0_ref[...], preferred_element_type=jnp.float32)
    h = jnp.maximum(h + b0_ref[...], 0.0)

    # Six 1x1 conv blocks: matmul + bias + relu (statically unrolled).
    for i in range(NUM_MID):
        h = jnp.dot(h.astype(jnp.bfloat16), wm_ref[i],
                    preferred_element_type=jnp.float32)
        h = jnp.maximum(h + bm_ref[i], 0.0)

    # Final 1x1 conv to (lane-padded) vocab.  Padded bias lanes are -1e30 so
    # they contribute nothing to the softmax below.
    logits = jnp.dot(h.astype(jnp.bfloat16), wf_ref[...],
                     preferred_element_type=jnp.float32) + bf_ref[...]

    # log_softmax over the channel (vocab) axis == last (lane) dim here.
    m = jnp.max(logits, axis=-1, keepdims=True)
    shifted = logits - m
    lse = jnp.log(jnp.sum(jnp.exp(shifted), axis=-1, keepdims=True))
    o_ref[...] = shifted - lse


def encoder_bn_pallas(x, params, *, tile_m=1024):
    """x: (B, L, C, H, W) float32.  Returns (B, L, vocab, H//4, W//4) float32."""
    w0, b0, wm, bm, wf, bf = params
    B, L, C, H, W = x.shape
    assert H % 4 == 0 and W % 4 == 0
    Hp, Wp = H // 4, W // 4
    K0 = C * 16
    stem = w0.shape[1]
    vocab = wf.shape[1]

    # Lane-dense padded feature sizes.
    K0p = _round_up(K0, LANE)
    Sp = _round_up(stem, LANE)
    Vp = _round_up(vocab, LANE)

    # --- glue: extract non-overlapping 4x4 patches, flatten to rows ---
    # TODO(synk): the patchify transpose still materializes one extra pass over
    # x; fusing the gather into the kernel would need the producer to hand us a
    # channel-last layout.
    BL = B * L
    xr = x.reshape(BL, C, Hp, 4, Wp, 4)
    xr = xr.transpose(0, 2, 4, 1, 3, 5)                  # (BL, Hp, Wp, C, 4, 4)
    xrows = xr.reshape(BL * Hp * Wp, K0)                 # (N, C*16)
    N = xrows.shape[0]

    # Row tiling: round tile_m, clamp it to the padded row count, pad rows.
    tile_m = _round_up(max(1, tile_m), ROW_MULT)
    tile_m = min(tile_m, _round_up(N, ROW_MULT))
    N_pad = _round_up(N, tile_m)

    # bf16 rows upstream halves HBM read traffic into the kernel.
    xrows = jnp.pad(xrows, ((0, N_pad - N), (0, K0p - K0))).astype(jnp.bfloat16)

    # --- pack / pad weights (zero pad; final-bias padding = -1e30) ---
    f32, bf16 = jnp.float32, jnp.bfloat16
    w0p = jnp.zeros((K0p, Sp), f32).at[:K0, :stem].set(w0).astype(bf16)
    b0p = jnp.zeros((1, Sp), f32).at[:, :stem].set(b0)
    wmp = jnp.zeros((NUM_MID, Sp, Sp), f32).at[:, :stem, :stem].set(wm).astype(bf16)
    bmp = jnp.zeros((NUM_MID, 1, Sp), f32).at[:, :, :stem].set(bm)
    wfp = jnp.zeros((Sp, Vp), f32).at[:stem, :vocab].set(wf).astype(bf16)
    bfp = jnp.full((1, Vp), -1e30, f32).at[:, :vocab].set(bf)

    grid = (N_pad // tile_m,)

    flops = 2 * N_pad * (K0p * Sp + NUM_MID * Sp * Sp + Sp * Vp)
    bytes_accessed = (N_pad * K0p * 2 + N_pad * Vp * 4
                      + (K0p * Sp + NUM_MID * Sp * Sp + Sp * Vp) * 2
                      + (Sp + NUM_MID * Sp + Vp) * 4)
    cost = pl.CostEstimate(flops=flops,
                           transcendentals=N_pad * (Vp + 1),
                           bytes_accessed=bytes_accessed)

    out_rows = pl.pallas_call(
        encoder_bn_kernel,
        out_shape=jax.ShapeDtypeStruct((N_pad, Vp), jnp.float32),
        grid_spec=pltpu.PrefetchScalarGridSpec(
            num_scalar_prefetch=0,
            grid=grid,
            in_specs=[
                pl.BlockSpec((tile_m, K0p), lambda i: (i, 0)),       # streamed rows
                pl.BlockSpec((K0p, Sp), lambda i: (0, 0)),           # grid-invariant
                pl.BlockSpec((1, Sp), lambda i: (0, 0)),
                pl.BlockSpec((NUM_MID, Sp, Sp), lambda i: (0, 0, 0)),
                pl.BlockSpec((NUM_MID, 1, Sp), lambda i: (0, 0, 0)),
                pl.BlockSpec((Sp, Vp), lambda i: (0, 0)),
                pl.BlockSpec((1, Vp), lambda i: (0, 0)),
            ],
            out_specs=pl.BlockSpec((tile_m, Vp), lambda i: (i, 0)),
        ),
        compiler_params=pltpu.CompilerParams(
            dimension_semantics=("parallel",),
            vmem_limit_bytes=64 << 20),
        cost_estimate=cost,
    )(xrows, w0p, b0p, wmp, bmp, wfp, bfp)

    # --- glue: drop padding, rows -> (B, L, vocab, Hp, Wp) ---
    out = out_rows[:N, :vocab].reshape(BL, Hp, Wp, vocab).transpose(0, 3, 1, 2)
    return out.reshape(B, L, vocab, Hp, Wp)


def init_params(key, in_channels, stem_channels, vocab_size):
    """Deterministic synthetic weights (shapes match the PyTorch module)."""
    k = jax.random.split(key, 8)
    K0 = in_channels * 16
    # Conv2d(in, stem, 4, 4): weight (stem, in, 4, 4) -> matmul weight (in*16, stem)
    w0_conv = jax.random.normal(k[0], (stem_channels, in_channels, 4, 4), jnp.float32)
    w0 = (w0_conv.reshape(stem_channels, K0).T * (1.0 / jnp.sqrt(K0))).astype(jnp.float32)
    b0 = 0.01 * jax.random.normal(k[1], (1, stem_channels), jnp.float32)
    # six 1x1 convs (stem, stem)
    wm = (jax.random.normal(k[2], (NUM_MID, stem_channels, stem_channels), jnp.float32)
          * (1.0 / jnp.sqrt(stem_channels)))
    bm = 0.01 * jax.random.normal(k[3], (NUM_MID, 1, stem_channels), jnp.float32)
    # final 1x1 conv (stem -> vocab)
    wf = (jax.random.normal(k[4], (stem_channels, vocab_size), jnp.float32)
          * (1.0 / jnp.sqrt(stem_channels)))
    bf = 0.01 * jax.random.normal(k[5], (1, vocab_size), jnp.float32)
    return w0, b0, wm, bm, wf, bf


def reference_jax(x, params):
    """Pure-JAX reference of the same math (same bf16 matmul / f32 accumulate)."""
    w0, b0, wm, bm, wf, bf = params
    B, L, C, H, W = x.shape
    Hp, Wp = H // 4, W // 4
    BL = B * L
    xr = x.reshape(BL, C, Hp, 4, Wp, 4).transpose(0, 2, 4, 1, 3, 5)
    h = xr.reshape(BL * Hp * Wp, C * 16)
    bf16, f32 = jnp.bfloat16, jnp.float32
    h = jnp.maximum(
        jnp.dot(h.astype(bf16), w0.astype(bf16), preferred_element_type=f32) + b0, 0.0)
    for i in range(NUM_MID):
        h = jnp.maximum(
            jnp.dot(h.astype(bf16), wm[i].astype(bf16), preferred_element_type=f32)
            + bm[i], 0.0)
    logits = jnp.dot(h.astype(bf16), wf.astype(bf16), preferred_element_type=f32) + bf
    out_rows = jax.nn.log_softmax(logits, axis=-1)
    vocab = wf.shape[1]
    return out_rows.reshape(BL, Hp, Wp, vocab).transpose(0, 3, 1, 2).reshape(
        B, L, vocab, Hp, Wp)


if __name__ == "__main__":
    B, L, C, H, W = 2, 3, 4, 16, 16
    stem, vocab = 32, 16

    key = jax.random.PRNGKey(0)
    kx, kp = jax.random.split(key)
    x = jax.random.normal(kx, (B, L, C, H, W), jnp.float32)
    params = init_params(kp, C, stem, vocab)

    encode = jax.jit(encoder_bn_pallas)
    out = jax.block_until_ready(encode(x, params))

    ref = jax.block_until_ready(reference_jax(x, params))
    assert out.shape == (B, L, vocab, H // 4, W // 4)
    assert bool(jnp.max(jnp.abs(out - ref)) < 2e-3)

    print("KERNEL_OK")
</pallas_src>

<mosaic_0001>
module attributes {stable_mosaic.version = 11 : i64} {
  func.func @encoder_bn_kernel(%arg0: i32, %arg1: memref<256x128xbf16, #tpu.memory_space<vmem>>, %arg2: memref<128x128xbf16, #tpu.memory_space<vmem>>, %arg3: memref<1x128xf32, #tpu.memory_space<vmem>>, %arg4: memref<6x128x128xbf16, #tpu.memory_space<vmem>>, %arg5: memref<6x1x128xf32, #tpu.memory_space<vmem>>, %arg6: memref<128x128xbf16, #tpu.memory_space<vmem>>, %arg7: memref<1x128xf32, #tpu.memory_space<vmem>>, %arg8: memref<256x128xf32, #tpu.memory_space<vmem>>) attributes {dimension_semantics = [#tpu.dimension_semantics<parallel>], iteration_bounds = array<i64: 1>, scalar_prefetch = 0 : i64, scratch_operands = 0 : i64, tpu.core_type = #tpu.core_type<tc>, window_params = [{transform_indices = @transform_0, window_bounds = array<i64: 256, 128>}, {pipeline_mode = #tpu.pipeline_mode<synchronous>, transform_indices = @transform_1, window_bounds = array<i64: 128, 128>}, {pipeline_mode = #tpu.pipeline_mode<synchronous>, transform_indices = @transform_2, window_bounds = array<i64: 1, 128>}, {pipeline_mode = #tpu.pipeline_mode<synchronous>, transform_indices = @transform_3, window_bounds = array<i64: 6, 128, 128>}, {pipeline_mode = #tpu.pipeline_mode<synchronous>, transform_indices = @transform_4, window_bounds = array<i64: 6, 1, 128>}, {pipeline_mode = #tpu.pipeline_mode<synchronous>, transform_indices = @transform_5, window_bounds = array<i64: 128, 128>}, {pipeline_mode = #tpu.pipeline_mode<synchronous>, transform_indices = @transform_6, window_bounds = array<i64: 1, 128>}, {transform_indices = @transform_7, window_bounds = array<i64: 256, 128>}]} {
    %c0 = arith.constant 0 : index
    %c0_0 = arith.constant 0 : index
    %0 = vector.load %arg1[%c0, %c0_0] : memref<256x128xbf16, #tpu.memory_space<vmem>>, vector<256x128xbf16>
    %c0_1 = arith.constant 0 : index
    %c0_2 = arith.constant 0 : index
    %1 = vector.load %arg2[%c0_1, %c0_2] : memref<128x128xbf16, #tpu.memory_space<vmem>>, vector<128x128xbf16>
    %cst = arith.constant dense<0.000000e+00> : vector<256x128xf32>
    %2 = tpu.matmul %0, %1, %cst {dimension_numbers = #tpu.dot_dimension_numbers<[1], [0], [0], [1], [0, 0, 1, 1], [], []>} : vector<256x128xbf16>, vector<128x128xbf16>, vector<256x128xf32> -> vector<256x128xf32>
    %c0_3 = arith.constant 0 : index
    %c0_4 = arith.constant 0 : index
    %3 = vector.load %arg3[%c0_3, %c0_4] : memref<1x128xf32, #tpu.memory_space<vmem>>, vector<1x128xf32>
    %4 = vector.broadcast %3 : vector<1x128xf32> to vector<256x128xf32>
    %5 = arith.addf %2, %4 : vector<256x128xf32>
    %cst_5 = arith.constant 0.000000e+00 : f32
    %6 = vector.broadcast %cst_5 : f32 to vector<256x128xf32>
    %7 = arith.maximumf %5, %6 : vector<256x128xf32>
    %8 = arith.truncf %7 : vector<256x128xf32> to vector<256x128xbf16>
    %c0_6 = arith.constant 0 : index
    %c0_7 = arith.constant 0 : index
    %c0_8 = arith.constant 0 : index
    %9 = vector.load %arg4[%c0_6, %c0_7, %c0_8] : memref<6x128x128xbf16, #tpu.memory_space<vmem>>, vector<1x128x128xbf16>
    %10 = vector.shape_cast %9 : vector<1x128x128xbf16> to vector<128x128xbf16>
    %cst_9 = arith.constant dense<0.000000e+00> : vector<256x128xf32>
    %11 = tpu.matmul %8, %10, %cst_9 {dimension_numbers = #tpu.dot_dimension_numbers<[1], [0], [0], [1], [0, 0, 1, 1], [], []>} : vector<256x128xbf16>, vector<128x128xbf16>, vector<256x128xf32> -> vector<256x128xf32>
    %c0_10 = arith.constant 0 : index
    %c0_11 = arith.constant 0 : index
    %c0_12 = arith.constant 0 : index
    %12 = vector.load %arg5[%c0_10, %c0_11, %c0_12] : memref<6x1x128xf32, #tpu.memory_space<vmem>>, vector<1x1x128xf32>
    %13 = vector.shape_cast %12 : vector<1x1x128xf32> to vector<1x128xf32>
    %14 = vector.broadcast %13 : vector<1x128xf32> to vector<256x128xf32>
    %15 = arith.addf %11, %14 : vector<256x128xf32>
    %cst_13 = arith.constant 0.000000e+00 : f32
    %16 = vector.broadcast %cst_13 : f32 to vector<256x128xf32>
    %17 = arith.maximumf %15, %16 : vector<256x128xf32>
    %18 = arith.truncf %17 : vector<256x128xf32> to vector<256x128xbf16>
    %c1 = arith.constant 1 : index
    %c0_14 = arith.constant 0 : index
    %c0_15 = arith.constant 0 : index
    %19 = vector.load %arg4[%c1, %c0_14, %c0_15] : memref<6x128x128xbf16, #tpu.memory_space<vmem>>, vector<1x128x128xbf16>
    %20 = vector.shape_cast %19 : vector<1x128x128xbf16> to vector<128x128xbf16>
    %cst_16 = arith.constant dense<0.000000e+00> : vector<256x128xf32>
    %21 = tpu.matmul %18, %20, %cst_16 {dimension_numbers = #tpu.dot_dimension_numbers<[1], [0], [0], [1], [0, 0, 1, 1], [], []>} : vector<256x128xbf16>, vector<128x128xbf16>, vector<256x128xf32> -> vector<256x128xf32>
    %c1_17 = arith.constant 1 : index
    %c0_18 = arith.constant 0 : index
    %c0_19 = arith.constant 0 : index
    %22 = vector.load %arg5[%c1_17, %c0_18, %c0_19] : memref<6x1x128xf32, #tpu.memory_space<vmem>>, vector<1x1x128xf32>
    %23 = vector.shape_cast %22 : vector<1x1x128xf32> to vector<1x128xf32>
    %24 = vector.broadcast %23 : vector<1x128xf32> to vector<256x128xf32>
    %25 = arith.addf %21, %24 : vector<256x128xf32>
    %cst_20 = arith.constant 0.000000e+00 : f32
    %26 = vector.broadcast %cst_20 : f32 to vector<256x128xf32>
    %27 = arith.maximumf %25, %26 : vector<256x128xf32>
    %28 = arith.truncf %27 : vector<256x128xf32> to vector<256x128xbf16>
    %c2 = arith.constant 2 : index
    %c0_21 = arith.constant 0 : index
    %c0_22 = arith.constant 0 : index
    %29 = vector.load %arg4[%c2, %c0_21, %c0_22] : memref<6x128x128xbf16, #tpu.memory_space<vmem>>, vector<1x128x128xbf16>
    %30 = vector.shape_cast %29 : vector<1x128x128xbf16> to vector<128x128xbf16>
    %cst_23 = arith.constant dense<0.000000e+00> : vector<256x128xf32>
    %31 = tpu.matmul %28, %30, %cst_23 {dimension_numbers = #tpu.dot_dimension_numbers<[1], [0], [0], [1], [0, 0, 1, 1], [], []>} : vector<256x128xbf16>, vector<128x128xbf16>, vector<256x128xf32> -> vector<256x128xf32>
    %c2_24 = arith.constant 2 : index
    %c0_25 = arith.constant 0 : index
    %c0_26 = arith.constant 0 : index
    %32 = vector.load %arg5[%c2_24, %c0_25, %c0_26] : memref<6x1x128xf32, #tpu.memory_space<vmem>>, vector<1x1x128xf32>
    %33 = vector.shape_cast %32 : vector<1x1x128xf32> to vector<1x128xf32>
    %34 = vector.broadcast %33 : vector<1x128xf32> to vector<256x128xf32>
    %35 = arith.addf %31, %34 : vector<256x128xf32>
    %cst_27 = arith.constant 0.000000e+00 : f32
    %36 = vector.broadcast %cst_27 : f32 to vector<256x128xf32>
    %37 = arith.maximumf %35, %36 : vector<256x128xf32>
    %38 = arith.truncf %37 : vector<256x128xf32> to vector<256x128xbf16>
    %c3 = arith.constant 3 : index
    %c0_28 = arith.constant 0 : index
    %c0_29 = arith.constant 0 : index
    %39 = vector.load %arg4[%c3, %c0_28, %c0_29] : memref<6x128x128xbf16, #tpu.memory_space<vmem>>, vector<1x128x128xbf16>
    %40 = vector.shape_cast %39 : vector<1x128x128xbf16> to vector<128x128xbf16>
    %cst_30 = arith.constant dense<0.000000e+00> : vector<256x128xf32>
    %41 = tpu.matmul %38, %40, %cst_30 {dimension_numbers = #tpu.dot_dimension_numbers<[1], [0], [0], [1], [0, 0, 1, 1], [], []>} : vector<256x128xbf16>, vector<128x128xbf16>, vector<256x128xf32> -> vector<256x128xf32>
    %c3_31 = arith.constant 3 : index
    %c0_32 = arith.constant 0 : index
    %c0_33 = arith.constant 0 : index
    %42 = vector.load %arg5[%c3_31, %c0_32, %c0_33] : memref<6x1x128xf32, #tpu.memory_space<vmem>>, vector<1x1x128xf32>
    %43 = vector.shape_cast %42 : vector<1x1x128xf32> to vector<1x128xf32>
    %44 = vector.broadcast %43 : vector<1x128xf32> to vector<256x128xf32>
    %45 = arith.addf %41, %44 : vector<256x128xf32>
    %cst_34 = arith.constant 0.000000e+00 : f32
    %46 = vector.broadcast %cst_34 : f32 to vector<256x128xf32>
    %47 = arith.maximumf %45, %46 : vector<256x128xf32>
    %48 = arith.truncf %47 : vector<256x128xf32> to vector<256x128xbf16>
    %c4 = arith.constant 4 : index
    %c0_35 = arith.constant 0 : index
    %c0_36 = arith.constant 0 : index
    %49 = vector.load %arg4[%c4, %c0_35, %c0_36] : memref<6x128x128xbf16, #tpu.memory_space<vmem>>, vector<1x128x128xbf16>
    %50 = vector.shape_cast %49 : vector<1x128x128xbf16> to vector<128x128xbf16>
    %cst_37 = arith.constant dense<0.000000e+00> : vector<256x128xf32>
    %51 = tpu.matmul %48, %50, %cst_37 {dimension_numbers = #tpu.dot_dimension_numbers<[1], [0], [0], [1], [0, 0, 1, 1], [], []>} : vector<256x128xbf16>, vector<128x128xbf16>, vector<256x128xf32> -> vector<256x128xf32>
    %c4_38 = arith.constant 4 : index
    %c0_39 = arith.constant 0 : index
    %c0_40 = arith.constant 0 : index
    %52 = vector.load %arg5[%c4_38, %c0_39, %c0_40] : memref<6x1x128xf32, #tpu.memory_space<vmem>>, vector<1x1x128xf32>
    %53 = vector.shape_cast %52 : vector<1x1x128xf32> to vector<1x128xf32>
    %54 = vector.broadcast %53 : vector<1x128xf32> to vector<256x128xf32>
    %55 = arith.addf %51, %54 : vector<256x128xf32>
    %cst_41 = arith.constant 0.000000e+00 : f32
    %56 = vector.broadcast %cst_41 : f32 to vector<256x128xf32>
    %57 = arith.maximumf %55, %56 : vector<256x128xf32>
    %58 = arith.truncf %57 : vector<256x128xf32> to vector<256x128xbf16>
    %c5 = arith.constant 5 : index
    %c0_42 = arith.constant 0 : index
    %c0_43 = arith.constant 0 : index
    %59 = vector.load %arg4[%c5, %c0_42, %c0_43] : memref<6x128x128xbf16, #tpu.memory_space<vmem>>, vector<1x128x128xbf16>
    %60 = vector.shape_cast %59 : vector<1x128x128xbf16> to vector<128x128xbf16>
    %cst_44 = arith.constant dense<0.000000e+00> : vector<256x128xf32>
    %61 = tpu.matmul %58, %60, %cst_44 {dimension_numbers = #tpu.dot_dimension_numbers<[1], [0], [0], [1], [0, 0, 1, 1], [], []>} : vector<256x128xbf16>, vector<128x128xbf16>, vector<256x128xf32> -> vector<256x128xf32>
    %c5_45 = arith.constant 5 : index
    %c0_46 = arith.constant 0 : index
    %c0_47 = arith.constant 0 : index
    %62 = vector.load %arg5[%c5_45, %c0_46, %c0_47] : memref<6x1x128xf32, #tpu.memory_space<vmem>>, vector<1x1x128xf32>
    %63 = vector.shape_cast %62 : vector<1x1x128xf32> to vector<1x128xf32>
    %64 = vector.broadcast %63 : vector<1x128xf32> to vector<256x128xf32>
    %65 = arith.addf %61, %64 : vector<256x128xf32>
    %cst_48 = arith.constant 0.000000e+00 : f32
    %66 = vector.broadcast %cst_48 : f32 to vector<256x128xf32>
    %67 = arith.maximumf %65, %66 : vector<256x128xf32>
    %68 = arith.truncf %67 : vector<256x128xf32> to vector<256x128xbf16>
    %c0_49 = arith.constant 0 : index
    %c0_50 = arith.constant 0 : index
    %69 = vector.load %arg6[%c0_49, %c0_50] : memref<128x128xbf16, #tpu.memory_space<vmem>>, vector<128x128xbf16>
    %cst_51 = arith.constant dense<0.000000e+00> : vector<256x128xf32>
    %70 = tpu.matmul %68, %69, %cst_51 {dimension_numbers = #tpu.dot_dimension_numbers<[1], [0], [0], [1], [0, 0, 1, 1], [], []>} : vector<256x128xbf16>, vector<128x128xbf16>, vector<256x128xf32> -> vector<256x128xf32>
    %c0_52 = arith.constant 0 : index
    %c0_53 = arith.constant 0 : index
    %71 = vector.load %arg7[%c0_52, %c0_53] : memref<1x128xf32, #tpu.memory_space<vmem>>, vector<1x128xf32>
    %72 = vector.broadcast %71 : vector<1x128xf32> to vector<256x128xf32>
    %73 = arith.addf %70, %72 : vector<256x128xf32>
    %cst_54 = arith.constant dense<0xFF800000> : vector<256xf32>
    %74 = vector.multi_reduction <maximumf>, %73, %cst_54 [1] : vector<256x128xf32> to vector<256xf32>
    %75 = vector.shape_cast %74 : vector<256xf32> to vector<256x1xf32>
    %76 = vector.broadcast %75 : vector<256x1xf32> to vector<256x128xf32>
    %77 = arith.subf %73, %76 : vector<256x128xf32>
    %78 = math.exp %77 : vector<256x128xf32>
    %cst_55 = arith.constant dense<0.000000e+00> : vector<256xf32>
    %79 = vector.multi_reduction <add>, %78, %cst_55 [1] : vector<256x128xf32> to vector<256xf32>
    %80 = vector.shape_cast %79 : vector<256xf32> to vector<256x1xf32>
    %81 = math.log %80 : vector<256x1xf32>
    %82 = vector.broadcast %81 : vector<256x1xf32> to vector<256x128xf32>
    %83 = arith.subf %77, %82 : vector<256x128xf32>
    %c0_56 = arith.constant 0 : index
    %c0_57 = arith.constant 0 : index
    %84 = vector.load %arg8[%c0_56, %c0_57] : memref<256x128xf32, #tpu.memory_space<vmem>>, vector<256x128xf32>
    tpu.vector_store %arg8[%c0_56, %c0_57], %83 {strides = array<i32>} : memref<256x128xf32, #tpu.memory_space<vmem>>, vector<256x128xf32>,
    return
  }
  func.func @transform_0(%arg0: i32) -> (i32, i32) {
    %c0_i32 = arith.constant 0 : i32
    %c0_i32_0 = arith.constant 0 : i32
    return %arg0, %c0_i32 : i32, i32
  }
  func.func @transform_1(%arg0: i32) -> (i32, i32) {
    %c0_i32 = arith.constant 0 : i32
    %c0_i32_0 = arith.constant 0 : i32
    %c0_i32_1 = arith.constant 0 : i32
    return %c0_i32, %c0_i32_0 : i32, i32
  }
  func.func @transform_2(%arg0: i32) -> (i32, i32) {
    %c0_i32 = arith.constant 0 : i32
    %c0_i32_0 = arith.constant 0 : i32
    %c0_i32_1 = arith.constant 0 : i32
    return %c0_i32, %c0_i32_0 : i32, i32
  }
  func.func @transform_3(%arg0: i32) -> (i32, i32, i32) {
    %c0_i32 = arith.constant 0 : i32
    %c0_i32_0 = arith.constant 0 : i32
    %c0_i32_1 = arith.constant 0 : i32
    %c0_i32_2 = arith.constant 0 : i32
    return %c0_i32, %c0_i32_0, %c0_i32_1 : i32, i32, i32
  }
  func.func @transform_4(%arg0: i32) -> (i32, i32, i32) {
    %c0_i32 = arith.constant 0 : i32
    %c0_i32_0 = arith.constant 0 : i32
    %c0_i32_1 = arith.constant 0 : i32
    %c0_i32_2 = arith.constant 0 : i32
    return %c0_i32, %c0_i32_0, %c0_i32_1 : i32, i32, i32
  }
  func.func @transform_5(%arg0: i32) -> (i32, i32) {
    %c0_i32 = arith.constant 0 : i32
    %c0_i32_0 = arith.constant 0 : i32
    %c0_i32_1 = arith.constant 0 : i32
    return %c0_i32, %c0_i32_0 : i32, i32
  }
  func.func @transform_6(%arg0: i32) -> (i32, i32) {
    %c0_i32 = arith.constant 0 : i32
    %c0_i32_0 = arith.constant 0 : i32
    %c0_i32_1 = arith.constant 0 : i32
    return %c0_i32, %c0_i32_0 : i32, i32
  }
  func.func @transform_7(%arg0: i32) -> (i32, i32) {
    %c0_i32 = arith.constant 0 : i32
    %c0_i32_0 = arith.constant 0 : i32
    return %arg0, %c0_i32 : i32, i32
  }
}

</mosaic_0001>

<bundles_post_ra>
// kernel: encoder_bn_pallas.1
= control target key start
LH: loop header
LB: loop body
LE: loop exit
PB: predicated region body
PF: predicated region fallthrough
CT: control target
= control target key end

     0   :  { %12 = vsyncpa [#allocation3], 0  ;;  %s4604_s0 = inlined_call_operand.hbm [shape: bf16[256,128], index: 0, kind: input, shape index: {}]   ;;  %s4605_s1 = inlined_call_operand.hbm [shape: bf16[128,128], index: 1, kind: input, shape index: {}]   ;;  %s4606_s2 = inlined_call_operand.hbm [shape: f32[1,128], index: 2, kind: input, shape index: {}]   ;;  %s4607_s3 = inlined_call_operand.hbm [shape: bf16[6,128,128], index: 3, kind: input, shape index: {}]   ;;  %s4608_s4 = inlined_call_operand.hbm [shape: f32[6,1,128], index: 4, kind: input, shape index: {}]   ;;  %s4609_s5 = inlined_call_operand.hbm [shape: bf16[128,128], index: 5, kind: input, shape index: {}]   ;;  %s4610_s6 = inlined_call_operand.hbm [shape: f32[1,128], index: 6, kind: input, shape index: {}]   ;;  %s4611_s7 = inlined_call_operand.hbm [shape: f32[256,128], index: 7, kind: output, shape index: {}]  }
   0x1   :  { %13 = vsyncpa [#allocation6], 0 }
   0x2   :  { %14 = vsyncpa [#allocation9], 0 }
   0x3   :  { %15 = vsyncpa [#allocation12], 0 }
   0x4   :  { %16 = vsyncpa [#allocation4], 0  ;;  %s3893_s24 = smov [#allocation5]   ;;  %s3894_s26 = smov [#allocation8]  }
   0x5   :  { %s34_s25 = sshll.u32 %s3893_s24, 4  ;;  %s56_s27 = sshll.u32 %s3894_s26, 4  ;;  %s35_s25 = int_to_ptr.vmem [resolvable:$true] %s34_s25  ;;  %s3947_s27 = int_to_ptr.vmem [resolvable:$true] %s56_s27 }
   0x6   :  { %s3707_s30 = scalar_lea.hbm %s4605_s1, 1024 }
   0x7   :  { %p3708_p0 = scmp.ne.s32.totalorder %s4605_s1, %s3707_s30  ;;  %p3711_p1 = scmp.lt.u32.totalorder %s3707_s30, %s4605_s1 }
   0x9   :  { %p3713_p2 = pnand %p3711_p1, %p3708_p0 }
   0xb   :  { %3716 = shalt.err (!%p3713_p2)
}
   0xc   :  { %s3717_s12 = scalar_lea.vmem %s35_s25, 1024  ;;  %p3722_p4 = scmp.lt.s32.totalorder %s35_s25, %s35_s25 }
   0xd   :  { %p3718_p3 = scmp.ne.s32.totalorder %s35_s25, %s3717_s12  ;;  %p3723_p5 = scmp.lt.s32.totalorder %s3717_s12, %s3717_s12 }
   0xf   :  { %p3724_p6 = por %p3723_p5, %p3722_p4 }
  0x11   :  { %p3725_p7 = pnand %p3724_p6, %p3718_p3 }
  0x13   :  { %3728 = shalt.err (!%p3725_p7)
}
  0x14   :  { %s3895_s13 = smov 64   ;;  %s3896_s14 = smov 4  }
  0x15   :  { %40 = dma.hbm_to_vmem [thread:$0]  %s4605_s1, 1024, %s35_s25, [#allocation6], %s3895_s13, %s3895_s13, %s3896_s14  }
  0x16   :  { %s3729_s19 = scalar_lea.hbm %s4607_s3, 6144 }
  0x17   :  { %p3730_p8 = scmp.ne.s32.totalorder %s4607_s3, %s3729_s19  ;;  %p3733_p9 = scmp.lt.u32.totalorder %s3729_s19, %s4607_s3 }
  0x19   :  { %p3735_p10 = pnand %p3733_p9, %p3730_p8 }
  0x1b   :  { %3738 = shalt.err (!%p3735_p10)
}
  0x1c   :  { %s3739_s24 = scalar_lea.vmem %s3947_s27, 6144  ;;  %p3744_p12 = scmp.lt.s32.totalorder %s3947_s27, %s3947_s27 }
  0x1d   :  { %p3740_p11 = scmp.ne.s32.totalorder %s3947_s27, %s3739_s24  ;;  %p3745_p13 = scmp.lt.s32.totalorder %s3739_s24, %s3739_s24 }
  0x1f   :  { %p3746_p0 = por %p3745_p13, %p3744_p12 }
  0x21   :  { %p3747_p1 = pnand %p3746_p0, %p3740_p11 }
  0x23   :  { %3750 = shalt.err (!%p3747_p1)
}
  0x24   :  { %62 = dma.hbm_to_vmem [thread:$0]  %s4607_s3, 6144, %s3947_s27, [#allocation9], %s3895_s13, %s3895_s13, %s3896_s14  }
  0x25   :  { %s3897_s26 = smov [#allocation11]   ;;  %s3898_s29 = smov [#allocation2]  }
  0x26   :  { %s80_s28 = sshll.u32 %s3897_s26, 4  ;;  %s22_s30 = sshll.u32 %s3898_s29, 4  ;;  %s81_s28 = int_to_ptr.vmem [resolvable:$true] %s80_s28  ;;  %s3984_s30 = int_to_ptr.vmem [resolvable:$true] %s22_s30 }
  0x27   :  { %s3751_s10 = scalar_lea.hbm %s4609_s5, 1024 }
  0x28   :  { %p3752_p2 = scmp.ne.s32.totalorder %s4609_s5, %s3751_s10  ;;  %p3755_p3 = scmp.lt.u32.totalorder %s3751_s10, %s4609_s5 }
  0x2a   :  { %p3757_p4 = pnand %p3755_p3, %p3752_p2 }
  0x2c   :  { %3760 = shalt.err (!%p3757_p4)
}
  0x2d   :  { %s3761_s3 = scalar_lea.vmem %s81_s28, 1024  ;;  %p3766_p6 = scmp.lt.s32.totalorder %s81_s28, %s81_s28 }
  0x2e   :  { %p3762_p5 = scmp.ne.s32.totalorder %s81_s28, %s3761_s3  ;;  %p3767_p7 = scmp.lt.s32.totalorder %s3761_s3, %s3761_s3 }
  0x30   :  { %p3768_p8 = por %p3767_p7, %p3766_p6 }
  0x32   :  { %p3769_p9 = pnand %p3768_p8, %p3762_p5 }
  0x34   :  { %3772 = shalt.err (!%p3769_p9)
}
  0x35   :  { %86 = dma.hbm_to_vmem [thread:$0]  %s4609_s5, 1024, %s81_s28, [#allocation12], %s3895_s13, %s3895_s13, %s3896_s14  }
  0x36   :  { %s3773_s20 = scalar_lea.hbm %s4604_s0, 2048 }
  0x37   :  { %p3774_p10 = scmp.ne.s32.totalorder %s4604_s0, %s3773_s20  ;;  %p3777_p11 = scmp.lt.u32.totalorder %s3773_s20, %s4604_s0 }
  0x39   :  { %p3779_p12 = pnand %p3777_p11, %p3774_p10 }
  0x3b   :  { %3782 = shalt.err (!%p3779_p12)
}
  0x3c   :  { %s3783_s1 = scalar_lea.vmem %s3984_s30, 2048  ;;  %p3788_p0 = scmp.lt.s32.totalorder %s3984_s30, %s3984_s30 }
  0x3d   :  { %p3784_p13 = scmp.ne.s32.totalorder %s3984_s30, %s3783_s1  ;;  %p3789_p1 = scmp.lt.s32.totalorder %s3783_s1, %s3783_s1 }
  0x3f   :  { %p3790_p2 = por %p3789_p1, %p3788_p0 }
  0x41   :  { %p3791_p3 = pnand %p3790_p2, %p3784_p13 }
  0x43   :  { %3794 = shalt.err (!%p3791_p3)
}
  0x44   :  { %28 = dma.hbm_to_vmem [thread:$0]  %s4604_s0, 2048, %s3984_s30, [#allocation3], %s3895_s13, %s3895_s13, %s3896_s14  }
  0x45   :  { %s3899_s26 = smov [#allocation7]   ;;  %s3900_s29 = smov [#allocation10]  }
  0x46   :  { %s47_s28 = sshll.u32 %s3899_s26, 4  ;;  %s68_s8 = sshll.u32 %s3900_s29, 4  ;;  %s48_s28 = int_to_ptr.vmem [resolvable:$true] %s47_s28  ;;  %s4021_s8 = int_to_ptr.vmem [resolvable:$true] %s68_s8 }
  0x47   :  { %s3795_s11 = scalar_lea.hbm %s4606_s2, 16 }
  0x48   :  { %p3796_p4 = scmp.ne.s32.totalorder %s4606_s2, %s3795_s11  ;;  %p3799_p5 = scmp.lt.u32.totalorder %s3795_s11, %s4606_s2 }
  0x4a   :  { %p3801_p6 = pnand %p3799_p5, %p3796_p4 }
  0x4c   :  { %3804 = shalt.err (!%p3801_p6)
}
  0x4d   :  { %s3805_s0 = scalar_lea.vmem %s48_s28, 16  ;;  %s3809_s13 = scalar_lea.vmem %s48_s28, 32 }
  0x4e   :  { %p3806_p7 = scmp.ne.s32.totalorder %s48_s28, %s3805_s0  ;;  %p3810_p8 = scmp.lt.s32.totalorder %s48_s28, %s48_s28 }
  0x4f   :  { %p3811_p9 = scmp.lt.s32.totalorder %s3809_s13, %s3805_s0 }
  0x51   :  { %p3812_p10 = por %p3811_p9, %p3810_p8 }
  0x53   :  { %p3813_p11 = pnand %p3812_p10, %p3806_p7 }
  0x55   :  { %3816 = shalt.err (!%p3813_p11)
}
  0x56   :  { %50 = dma.hbm_to_vmem [thread:$0]  %s4606_s2, 16, %s48_s28, [#allocation6]  }
  0x57   :  { %s3817_s18 = scalar_lea.hbm %s4608_s4, 96 }
  0x58   :  { %p3818_p12 = scmp.ne.s32.totalorder %s4608_s4, %s3817_s18  ;;  %p3821_p13 = scmp.lt.u32.totalorder %s3817_s18, %s4608_s4 }
  0x5a   :  { %p3823_p0 = pnand %p3821_p13, %p3818_p12 }
  0x5c   :  { %3826 = shalt.err (!%p3823_p0)
}
  0x5d   :  { %s3827_s23 = scalar_lea.vmem %s4021_s8, 96  ;;  %p3832_p2 = scmp.lt.s32.totalorder %s4021_s8, %s4021_s8 }
  0x5e   :  { %p3828_p1 = scmp.ne.s32.totalorder %s4021_s8, %s3827_s23  ;;  %p3833_p3 = scmp.lt.s32.totalorder %s3827_s23, %s3827_s23 }
  0x60   :  { %p3834_p4 = por %p3833_p3, %p3832_p2 }
  0x62   :  { %p3835_p5 = pnand %p3834_p4, %p3828_p1 }
  0x64   :  { %3838 = shalt.err (!%p3835_p5)
}
  0x65   :  { %s3901_s2 = smov 16   ;;  %s3902_s24 = smov 1  }
  0x66   :  { %74 = dma.hbm_to_vmem [thread:$0]  %s4608_s4, 96, %s4021_s8, [#allocation9], %s3901_s2, %s3901_s2, %s3902_s24  }
  0x67   :  { %s3903_s25 = smov [#allocation13]   ;;  %s3839_s9 = scalar_lea.hbm %s4610_s6, 16 }
  0x68   :  { %s93_s26 = sshll.u32 %s3903_s25, 4  ;;  %p3840_p6 = scmp.ne.s32.totalorder %s4610_s6, %s3839_s9  ;;  %s94_s26 = int_to_ptr.vmem [resolvable:$true] %s93_s26 }
  0x69   :  { %p3843_p7 = scmp.lt.u32.totalorder %s3839_s9, %s4610_s6 }
  0x6b   :  { %p3845_p8 = pnand %p3843_p7, %p3840_p6 }
  0x6d   :  { %3848 = shalt.err (!%p3845_p8)
}
  0x6e   :  { %s3849_s16 = scalar_lea.vmem %s94_s26, 16  ;;  %s3853_s4 = scalar_lea.vmem %s94_s26, 32 }
  0x6f   :  { %p3850_p9 = scmp.ne.s32.totalorder %s94_s26, %s3849_s16  ;;  %p3854_p10 = scmp.lt.s32.totalorder %s94_s26, %s94_s26 }
  0x70   :  { %p3855_p11 = scmp.lt.s32.totalorder %s3853_s4, %s3849_s16 }
  0x72   :  { %p3856_p12 = por %p3855_p11, %p3854_p10 }
  0x74   :  { %p3857_p13 = pnand %p3856_p12, %p3850_p9 }
  0x76   :  { %3860 = shalt.err (!%p3857_p13)
}
  0x77   :  { %96 = dma.hbm_to_vmem [thread:$0]  %s4610_s6, 16, %s94_s26, [#allocation12]  }
  0x78   :  { %3883 = dma.done.wait [#allocation3], 2048  }
  0x79   :  { %3884 = vsyncadd [#allocation3], 4294965248 }
  0x7a   :  { %3885 = dma.done.wait [#allocation6], 1040  }
  0x7b   :  { %3886 = vsyncadd [#allocation6], 4294966256 }
  0x7c   :  { %3887 = dma.done.wait [#allocation9], 6240  }
  0x7d   :  { %3888 = vsyncadd [#allocation9], 4294961056 }
  0x7e   :  { %3889 = dma.done.wait [#allocation12], 1040  }
  0x7f   :  { %3890 = vsyncadd [#allocation12], 4294966256  ;;  %v3499_v0 = vld [vmem:[#allocation5] sm:$0xff]   ;;  %v3500_v1 = vld [vmem:[#allocation5 + $0x8] sm:$0xff]   ;;  %s3904_s6 = smov [#allocation14]  }
  0x80   :  { %3101 = vmatprep.subr.bf16.mxu0 %v3499_v0  ;;  %v3501_v2 = vld [vmem:[#allocation5 + $0x10] sm:$0xff]   ;;  %v3502_v3 = vld [vmem:[#allocation5 + $0x18] sm:$0xff]   ;;  %v3507_v4 = vld [vmem:[#allocation2] sm:$0xff]   ;;  %s2806_s0 = sshll.u32 %s3904_s6, 4  ;;  %s2807_s0 = int_to_ptr.vmem [resolvable:$true] %s2806_s0 }
  0x81   :  { %3102 = vmatpush3.bf16.msra.mxu0 %v3499_v0  ;;  %3117 = vmatprep.mubr.bf16.mxu0 %v3507_v4  ;;  %v3503_v5 = vld [vmem:[#allocation5 + $0x20] sm:$0xff]   ;;  %v3504_v6 = vld [vmem:[#allocation5 + $0x28] sm:$0xff]   ;;  %v3505_v7 = vld [vmem:[#allocation5 + $0x30] sm:$0xff]   ;;  %s3861_s13 = scalar_lea.vmem %s2807_s0, 4096  ;;  %p3866_p1 = scmp.lt.s32.totalorder %s2807_s0, %s2807_s0 }
  0x82   :  { %3103 = vmatprep.subr.bf16.mxu0 %v3500_v1  ;;  %v3506_v8 = vld [vmem:[#allocation5 + $0x38] sm:$0xff]   ;;  %v3523_v9 = vld [vmem:[#allocation8] sm:$0xff]   ;;  %v3524_v10 = vld [vmem:[#allocation8 + $0x8] sm:$0xff]   ;;  %p3862_p0 = scmp.ne.s32.totalorder %s2807_s0, %s3861_s13  ;;  %p3867_p2 = scmp.lt.s32.totalorder %s3861_s13, %s3861_s13 }
  0x83   :  { %3149 = vmatprep.subr.bf16.mxu1 %v3523_v9  ;;  %v3508_v11 = vld [vmem:[#allocation2 + $0x8] sm:$0xff]   ;;  %v3525_v12 = vld [vmem:[#allocation8 + $0x10] sm:$0xff]   ;;  %v3526_v14 = vld [vmem:[#allocation8 + $0x18] sm:$0xff]  }
  0x84   :  { %3150 = vmatpush3.bf16.msra.mxu1 %v3523_v9  ;;  %v3509_v13 = vld [vmem:[#allocation2 + $0x10] sm:$0xff]   ;;  %v3527_v15 = vld [vmem:[#allocation8 + $0x20] sm:$0xff]   ;;  %v3510_v16 = vld [vmem:[#allocation2 + $0x18] sm:$0xff]   ;;  %p3868_p3 = por %p3867_p2, %p3866_p1 }
  0x85   :  { %3104 = vmatpush3.bf16.msra.mxu0 %v3500_v1  ;;  %3151 = vmatprep.subr.bf16.mxu1 %v3524_v10  ;;  %v3511_v17 = vld [vmem:[#allocation2 + $0x20] sm:$0xff]   ;;  %v3528_v18 = vld [vmem:[#allocation8 + $0x28] sm:$0xff]   ;;  %v3514_v21 = vld [vmem:[#allocation2 + $0x38] sm:$0xff]  }
  0x86   :  { %3105 = vmatprep.subr.bf16.mxu0 %v3501_v2  ;;  %v3512_v19 = vld [vmem:[#allocation2 + $0x28] sm:$0xff]   ;;  %v3513_v20 = vld [vmem:[#allocation2 + $0x30] sm:$0xff]   ;;  %v3515_v22 = vld [vmem:[#allocation2 + $0x40] sm:$0xff]   ;;  %p3869_p4 = pnand %p3868_p3, %p3862_p0 }
  0x87   :  { %v3516_v23 = vld [vmem:[#allocation2 + $0x48] sm:$0xff]   ;;  %v3517_v24 = vld [vmem:[#allocation2 + $0x50] sm:$0xff]   ;;  %v3518_v25 = vld [vmem:[#allocation2 + $0x58] sm:$0xff]  }
  0x88   :  { %3152 = vmatpush3.bf16.msra.mxu1 %v3524_v10  ;;  %v3519_v26 = vld [vmem:[#allocation2 + $0x60] sm:$0xff]   ;;  %v3520_v27 = vld [vmem:[#allocation2 + $0x68] sm:$0xff]   ;;  %v3521_v28 = vld [vmem:[#allocation2 + $0x70] sm:$0xff]  }
  0x89   :  { %3106 = vmatpush3.bf16.msra.mxu0 %v3501_v2  ;;  %3153 = vmatprep.subr.bf16.mxu1 %v3525_v12  ;;  %v3522_v29 = vld [vmem:[#allocation2 + $0x78] sm:$0xff]   ;;  %v3531_v32 = vld [vmem:[#allocation8 + $0x40] sm:$0xff]   ;;  %v3532_v33 = vld [vmem:[#allocation8 + $0x48] sm:$0xff]  }
  0x8a   :  { %3107 = vmatprep.subr.bf16.mxu0 %v3502_v3  ;;  %v3529_v30 = vld [vmem:[#allocation8 + $0x30] sm:$0xff]   ;;  %v3530_v31 = vld [vmem:[#allocation8 + $0x38] sm:$0xff]   ;;  %v3535_v36 = vld [vmem:[#allocation8 + $0x60] sm:$0xff]  }
  0x8b   :  { %v3533_v34 = vld [vmem:[#allocation8 + $0x50] sm:$0xff]   ;;  %v3534_v35 = vld [vmem:[#allocation8 + $0x58] sm:$0xff]   ;;  %v3536_v37 = vld [vmem:[#allocation8 + $0x68] sm:$0xff]  }
  0x8c   :  { %3154 = vmatpush3.bf16.msra.mxu1 %v3525_v12  ;;  %v3537_v38 = vld [vmem:[#allocation8 + $0x70] sm:$0xff]   ;;  %v4064_v39 = vld [vmem:[#allocation7] ss:$0 sm:$0xff] }
  0x8d   :  { %3108 = vmatpush3.bf16.msra.mxu0 %v3502_v3  ;;  %3155 = vmatprep.subr.bf16.mxu1 %v3526_v14 }
  0x8e   :  { %3109 = vmatprep.subr.bf16.mxu0 %v3503_v5 }
  0x90   :  { %3156 = vmatpush3.bf16.msra.mxu1 %v3526_v14 }
  0x91   :  { %3110 = vmatpush3.bf16.msra.mxu0 %v3503_v5  ;;  %3157 = vmatprep.subr.bf16.mxu1 %v3527_v15 }
  0x92   :  { %3111 = vmatprep.subr.bf16.mxu0 %v3504_v6 }
  0x94   :  { %3158 = vmatpush3.bf16.msra.mxu1 %v3527_v15 }
  0x95   :  { %3112 = vmatpush3.bf16.msra.mxu0 %v3504_v6  ;;  %3159 = vmatprep.subr.bf16.mxu1 %v3528_v18 }
  0x96   :  { %3113 = vmatprep.subr.bf16.mxu0 %v3505_v7 }
  0x98   :  { %3160 = vmatpush3.bf16.msra.mxu1 %v3528_v18 }
  0x99   :  { %3114 = vmatpush3.bf16.msra.mxu0 %v3505_v7  ;;  %3161 = vmatprep.subr.bf16.mxu1 %v3529_v30 }
  0x9a   :  { %3115 = vmatprep.subr.bf16.mxu0 %v3506_v8 }
  0x9c   :  { %3162 = vmatpush3.bf16.msra.mxu1 %v3529_v30 }
  0x9d   :  { %3116 = vmatpush3.bf16.msra.mxu0 %v3506_v8  ;;  %3163 = vmatprep.subr.bf16.mxu1 %v3530_v31 }
  0x9e   :  { %3197 = vmatprep.subr.bf16.mxu0 %v3531_v32 }
  0xa0   :  { %3118 = vmatmul.mubr.bf16.vlgmr.msra.gmra.mrb[0].mxu0 %v3508_v11  ;;  %3164 = vmatpush3.bf16.msra.mxu1 %v3530_v31 }
  0xa1   :  { %3121 = vmatprep.mubr.bf16.mxu0 %v3509_v13  ;;  %3198 = vmatpush3.bf16.msra.mxu0 %v3531_v32 }
  0xa2   :  { %3199 = vmatprep.subr.bf16.mxu0 %v3532_v33 }
  0xa5   :  { %3200 = vmatpush3.bf16.msra.mxu0 %v3532_v33 }
  0xa6   :  { %3201 = vmatprep.subr.bf16.mxu0 %v3533_v34 }
  0xa8   :  { %3122 = vmatmul.mubr.bf16.gmra.mrb[4].mxu0 %v3510_v16 }
  0xa9   :  { %3125 = vmatprep.mubr.bf16.mxu0 %v3511_v17  ;;  %3202 = vmatpush3.bf16.msra.mxu0 %v3533_v34 }
  0xaa   :  { %3203 = vmatprep.subr.bf16.mxu0 %v3534_v35 }
  0xad   :  { %3204 = vmatpush3.bf16.msra.mxu0 %v3534_v35 }
  0xae   :  { %3205 = vmatprep.subr.bf16.mxu0 %v3535_v36 }
  0xb0   :  { %3126 = vmatmul.mubr.bf16.gmra.mrb[8].mxu0 %v3512_v19 }
  0xb1   :  { %3129 = vmatprep.mubr.bf16.mxu0 %v3513_v20  ;;  %3206 = vmatpush3.bf16.msra.mxu0 %v3535_v36 }
  0xb2   :  { %3207 = vmatprep.subr.bf16.mxu0 %v3536_v37 }
  0xb5   :  { %3208 = vmatpush3.bf16.msra.mxu0 %v3536_v37 }
  0xb6   :  { %3209 = vmatprep.subr.bf16.mxu0 %v3537_v38 }
  0xb8   :  { %3130 = vmatmul.mubr.bf16.gmra.mrb[12].mxu0 %v3514_v21 }
  0xb9   :  { %3133 = vmatprep.mubr.bf16.mxu0 %v3515_v22  ;;  %3210 = vmatpush3.bf16.msra.mxu0 %v3537_v38 }
  0xc0   :  { %3134 = vmatmul.mubr.bf16.gmra.mrb[16].mxu0 %v3516_v23 }
  0xc1   :  { %3137 = vmatprep.mubr.bf16.mxu0 %v3517_v24 }
  0xc8   :  { %3138 = vmatmul.mubr.bf16.gmra.mrb[20].mxu0 %v3518_v25 }
  0xc9   :  { %3141 = vmatprep.mubr.bf16.mxu0 %v3519_v26 }
  0xd0   :  { %3142 = vmatmul.mubr.bf16.gmra.mrb[24].mxu0 %v3520_v27 }
  0xd1   :  { %3145 = vmatprep.mubr.bf16.mxu0 %v3521_v28 }
  0xd8   :  { %3146 = vmatmul.mubr.bf16.gmra.mrb[28].mxu0 %v3522_v29 }
 0x173   :  { %v3119_v40 = vpop.f32.mrb[0].mxu0 }
 0x174   :  { %v361_v41 = vadd.f32 %v3119_v40, %v4064_v39  ;;  %v352_v42 = vpop.f32.mrb[1].mxu0 }
 0x175   :  { %v353_v43 = vadd.f32 %v4064_v39, %v352_v42  ;;  %v3120_v44 = vpop.f32.mrb[2].mxu0 }
 0x176   :  { %v364_v45 = vadd.f32 %v3120_v44, %v4064_v39  ;;  %v355_v46 = vpop.f32.mrb[3].mxu0  ;;  %v481_v48 = vmax.f32 %v361_v41, 0.0 }
 0x177   :  { %v356_v47 = vadd.f32 %v4064_v39, %v355_v46  ;;  %v479_v50 = vmax.f32 %v353_v43, 0.0 }
 0x178   :  { %v482_v49 = vmax.f32 %v364_v45, 0.0 }
 0x179   :  { %v480_v51 = vmax.f32 %v356_v47, 0.0 }
 0x17a   :  { %v512_v52 = vpack.c.bf16 %v482_v49, %v481_v48 }
 0x17b   :  { %v3123_v53 = vpop.f32.mrb[4].mxu0  ;;  %v511_v54 = vpack.c.bf16 %v480_v51, %v479_v50 }
 0x17c   :  { %v377_v55 = vadd.f32 %v3123_v53, %v4064_v39  ;;  %v368_v56 = vpop.f32.mrb[5].mxu0 }
 0x17d   :  { %v369_v57 = vadd.f32 %v4064_v39, %v368_v56  ;;  %v3124_v58 = vpop.f32.mrb[6].mxu0  ;;  %3165 = vmatprep.mubr.bf16.mxu1 %v511_v54 }
 0x17e   :  { %v485_v59 = vmax.f32 %v377_v55, 0.0  ;;  %v380_v60 = vadd.f32 %v3124_v58, %v4064_v39  ;;  %v371_v61 = vpop.f32.mrb[7].mxu0  ;;  %3166 = vmatmul.mubr.bf16.vlgmr.msra.gmra.mrb[0].mxu1 %v512_v52 }
 0x17f   :  { %v372_v62 = vadd.f32 %v4064_v39, %v371_v61  ;;  %v483_v0 = vmax.f32 %v369_v57, 0.0 }
 0x180   :  { %v486_v63 = vmax.f32 %v380_v60, 0.0 }
 0x181   :  { %v484_v1 = vmax.f32 %v372_v62, 0.0 }
 0x182   :  { %v514_v2 = vpack.c.bf16 %v486_v63, %v485_v59 }
 0x183   :  { %v513_v3 = vpack.c.bf16 %v484_v1, %v483_v0  ;;  %v3127_v4 = vpop.f32.mrb[8].mxu0 }
 0x184   :  { %v393_v5 = vadd.f32 %v3127_v4, %v4064_v39  ;;  %v384_v6 = vpop.f32.mrb[9].mxu0 }
 0x185   :  { %v385_v7 = vadd.f32 %v4064_v39, %v384_v6  ;;  %v3128_v8 = vpop.f32.mrb[10].mxu0  ;;  %3169 = vmatprep.mubr.bf16.mxu1 %v513_v3 }
 0x186   :  { %v489_v9 = vmax.f32 %v393_v5, 0.0  ;;  %v396_v10 = vadd.f32 %v3128_v8, %v4064_v39  ;;  %v387_v11 = vpop.f32.mrb[11].mxu0  ;;  %3170 = vmatmul.mubr.bf16.gmra.mrb[4].mxu1 %v514_v2 }
 0x187   :  { %v388_v12 = vadd.f32 %v4064_v39, %v387_v11  ;;  %v487_v14 = vmax.f32 %v385_v7, 0.0 }
 0x188   :  { %v490_v13 = vmax.f32 %v396_v10, 0.0 }
 0x189   :  { %v488_v15 = vmax.f32 %v388_v12, 0.0 }
 0x18a   :  { %v516_v16 = vpack.c.bf16 %v490_v13, %v489_v9 }
 0x18b   :  { %v515_v17 = vpack.c.bf16 %v488_v15, %v487_v14  ;;  %v3131_v18 = vpop.f32.mrb[12].mxu0 }
 0x18c   :  { %v409_v19 = vadd.f32 %v3131_v18, %v4064_v39  ;;  %v400_v20 = vpop.f32.mrb[13].mxu0 }
 0x18d   :  { %v401_v21 = vadd.f32 %v4064_v39, %v400_v20  ;;  %v3132_v22 = vpop.f32.mrb[14].mxu0  ;;  %3173 = vmatprep.mubr.bf16.mxu1 %v515_v17 }
 0x18e   :  { %v493_v23 = vmax.f32 %v409_v19, 0.0  ;;  %v412_v24 = vadd.f32 %v3132_v22, %v4064_v39  ;;  %v403_v25 = vpop.f32.mrb[15].mxu0  ;;  %3174 = vmatmul.mubr.bf16.gmra.mrb[8].mxu1 %v516_v16 }
 0x18f   :  { %v404_v26 = vadd.f32 %v4064_v39, %v403_v25  ;;  %v491_v28 = vmax.f32 %v401_v21, 0.0  ;;  %v3538_v25 = vld [vmem:[#allocation8 + $0x78] sm:$0xff]  }
 0x190   :  { %v494_v27 = vmax.f32 %v412_v24, 0.0  ;;  %3211 = vmatprep.subr.bf16.mxu0 %v3538_v25 }
 0x191   :  { %v492_v29 = vmax.f32 %v404_v26, 0.0  ;;  %3212 = vmatpush3.bf16.msra.mxu0 %v3538_v25  ;;  %v3539_v26 = vld [vmem:[#allocation8 + $0x80] sm:$0xff]  }
 0x192   :  { %v518_v30 = vpack.c.bf16 %v494_v27, %v493_v23  ;;  %v3540_v27 = vld [vmem:[#allocation8 + $0x88] sm:$0xff]   ;;  %3245 = vmatprep.subr.bf16.mxu1 %v3539_v26 }
 0x193   :  { %v517_v31 = vpack.c.bf16 %v492_v29, %v491_v28  ;;  %v3135_v32 = vpop.f32.mrb[16].mxu0  ;;  %3246 = vmatpush3.bf16.msra.mxu1 %v3539_v26  ;;  %v3541_v28 = vld [vmem:[#allocation8 + $0x90] sm:$0xff]   ;;  %v3542_v29 = vld [vmem:[#allocation8 + $0x98] sm:$0xff]  }
 0x194   :  { %v425_v33 = vadd.f32 %v3135_v32, %v4064_v39  ;;  %v416_v34 = vpop.f32.mrb[17].mxu0  ;;  %3247 = vmatprep.subr.bf16.mxu1 %v3540_v27  ;;  %v4098_v32 = vld [vmem:[#allocation10] ss:$0 sm:$0xff] }
 0x195   :  { %v417_v35 = vadd.f32 %v4064_v39, %v416_v34  ;;  %v3136_v36 = vpop.f32.mrb[18].mxu0  ;;  %3177 = vmatprep.mubr.bf16.mxu1 %v517_v31  ;;  %v3545_v31 = vld [vmem:[#allocation8 + $0xb0] sm:$0xff]  }
 0x196   :  { %v497_v37 = vmax.f32 %v425_v33, 0.0  ;;  %v428_v38 = vadd.f32 %v3136_v36, %v4064_v39  ;;  %v419_v40 = vpop.f32.mrb[19].mxu0  ;;  %3178 = vmatmul.mubr.bf16.gmra.mrb[12].mxu1 %v518_v30  ;;  %v3544_v30 = vld [vmem:[#allocation8 + $0xa8] sm:$0xff]  }
 0x197   :  { %v420_v41 = vadd.f32 %v4064_v39, %v419_v40  ;;  %v495_v43 = vmax.f32 %v417_v35, 0.0  ;;  %3248 = vmatpush3.bf16.msra.mxu1 %v3540_v27 }
 0x198   :  { %v498_v42 = vmax.f32 %v428_v38, 0.0  ;;  %3249 = vmatprep.subr.bf16.mxu1 %v3541_v28 }
 0x199   :  { %v496_v44 = vmax.f32 %v420_v41, 0.0 }
 0x19a   :  { %v520_v45 = vpack.c.bf16 %v498_v42, %v497_v37 }
 0x19b   :  { %v519_v46 = vpack.c.bf16 %v496_v44, %v495_v43  ;;  %v3139_v47 = vpop.f32.mrb[20].mxu0  ;;  %3250 = vmatpush3.bf16.msra.mxu1 %v3541_v28 }
 0x19c   :  { %v441_v48 = vadd.f32 %v3139_v47, %v4064_v39  ;;  %v432_v49 = vpop.f32.mrb[21].mxu0  ;;  %3251 = vmatprep.subr.bf16.mxu1 %v3542_v29 }
 0x19d   :  { %v433_v50 = vadd.f32 %v4064_v39, %v432_v49  ;;  %v3140_v51 = vpop.f32.mrb[22].mxu0  ;;  %3181 = vmatprep.mubr.bf16.mxu1 %v519_v46 }
 0x19e   :  { %v501_v52 = vmax.f32 %v441_v48, 0.0  ;;  %v444_v53 = vadd.f32 %v3140_v51, %v4064_v39  ;;  %v435_v54 = vpop.f32.mrb[23].mxu0  ;;  %3182 = vmatmul.mubr.bf16.gmra.mrb[16].mxu1 %v520_v45 }
 0x19f   :  { %v436_v55 = vadd.f32 %v4064_v39, %v435_v54  ;;  %v499_v57 = vmax.f32 %v433_v50, 0.0  ;;  %3252 = vmatpush3.bf16.msra.mxu1 %v3542_v29 }
 0x1a0   :  { %v502_v56 = vmax.f32 %v444_v53, 0.0 }
 0x1a1   :  { %v500_v58 = vmax.f32 %v436_v55, 0.0 }
 0x1a2   :  { %v522_v59 = vpack.c.bf16 %v502_v56, %v501_v52 }
 0x1a3   :  { %v521_v60 = vpack.c.bf16 %v500_v58, %v499_v57  ;;  %v3143_v61 = vpop.f32.mrb[24].mxu0 }
 0x1a4   :  { %v457_v62 = vadd.f32 %v3143_v61, %v4064_v39  ;;  %v448_v63 = vpop.f32.mrb[25].mxu0 }
 0x1a5   :  { %v449_v0 = vadd.f32 %v4064_v39, %v448_v63  ;;  %v3144_v1 = vpop.f32.mrb[26].mxu0  ;;  %3185 = vmatprep.mubr.bf16.mxu1 %v521_v60 }
 0x1a6   :  { %v505_v2 = vmax.f32 %v457_v62, 0.0  ;;  %v460_v3 = vadd.f32 %v3144_v1, %v4064_v39  ;;  %v451_v4 = vpop.f32.mrb[27].mxu0  ;;  %3186 = vmatmul.mubr.bf16.gmra.mrb[20].mxu1 %v522_v59 }
 0x1a7   :  { %v452_v5 = vadd.f32 %v4064_v39, %v451_v4  ;;  %v503_v7 = vmax.f32 %v449_v0, 0.0 }
 0x1a8   :  { %v506_v6 = vmax.f32 %v460_v3, 0.0 }
 0x1a9   :  { %v504_v8 = vmax.f32 %v452_v5, 0.0 }
 0x1aa   :  { %v524_v9 = vpack.c.bf16 %v506_v6, %v505_v2 }
 0x1ab   :  { %v523_v10 = vpack.c.bf16 %v504_v8, %v503_v7  ;;  %v3147_v11 = vpop.f32.mrb[28].mxu0 }
 0x1ac   :  { %v473_v12 = vadd.f32 %v3147_v11, %v4064_v39  ;;  %v464_v13 = vpop.f32.mrb[29].mxu0 }
 0x1ad   :  { %v465_v14 = vadd.f32 %v4064_v39, %v464_v13  ;;  %v3148_v15 = vpop.f32.mrb[30].mxu0  ;;  %3189 = vmatprep.mubr.bf16.mxu1 %v523_v10 }
 0x1ae   :  { %v509_v16 = vmax.f32 %v473_v12, 0.0  ;;  %v476_v17 = vadd.f32 %v3148_v15, %v4064_v39  ;;  %v467_v18 = vpop.f32.mrb[31].mxu0  ;;  %3190 = vmatmul.mubr.bf16.gmra.mrb[24].mxu1 %v524_v9 }
 0x1af   :  { %v468_v19 = vadd.f32 %v4064_v39, %v467_v18  ;;  %v507_v21 = vmax.f32 %v465_v14, 0.0  ;;  %v3543_v39 = vld [vmem:[#allocation8 + $0xa0] sm:$0xff]  }
 0x1b0   :  { %v510_v20 = vmax.f32 %v476_v17, 0.0  ;;  %3253 = vmatprep.subr.bf16.mxu1 %v3543_v39 }
 0x1b1   :  { %v508_v22 = vmax.f32 %v468_v19, 0.0  ;;  %3254 = vmatpush3.bf16.msra.mxu1 %v3543_v39 }
 0x1b2   :  { %v526_v23 = vpack.c.bf16 %v510_v20, %v509_v16  ;;  %3255 = vmatprep.subr.bf16.mxu1 %v3544_v30 }
 0x1b3   :  { %v525_v24 = vpack.c.bf16 %v508_v22, %v507_v21 }
 0x1b5   :  { %3193 = vmatprep.mubr.bf16.mxu1 %v525_v24  ;;  %3256 = vmatpush3.bf16.msra.mxu1 %v3544_v30 }
 0x1b6   :  { %3194 = vmatmul.mubr.bf16.gmra.mrb[28].mxu1 %v526_v23  ;;  %3257 = vmatprep.subr.bf16.mxu1 %v3545_v31 }
 0x1b9   :  { %3258 = vmatpush3.bf16.msra.mxu1 %v3545_v31 }
 0x251   :  { %v3167_v33 = vpop.f32.mrb[0].mxu1 }
 0x252   :  { %v641_v34 = vadd.f32 %v3167_v33, %v4098_v32  ;;  %v632_v35 = vpop.f32.mrb[1].mxu1 }
 0x253   :  { %v633_v36 = vadd.f32 %v4098_v32, %v632_v35  ;;  %v3168_v37 = vpop.f32.mrb[2].mxu1 }
 0x254   :  { %v644_v38 = vadd.f32 %v3168_v37, %v4098_v32  ;;  %v635_v40 = vpop.f32.mrb[3].mxu1  ;;  %v761_v42 = vmax.f32 %v641_v34, 0.0 }
 0x255   :  { %v636_v41 = vadd.f32 %v4098_v32, %v635_v40  ;;  %v759_v44 = vmax.f32 %v633_v36, 0.0 }
 0x256   :  { %v762_v43 = vmax.f32 %v644_v38, 0.0 }
 0x257   :  { %v760_v45 = vmax.f32 %v636_v41, 0.0 }
 0x258   :  { %v792_v46 = vpack.c.bf16 %v762_v43, %v761_v42 }
 0x259   :  { %v791_v47 = vpack.c.bf16 %v760_v45, %v759_v44  ;;  %v3171_v48 = vpop.f32.mrb[4].mxu1 }
 0x25a   :  { %v657_v49 = vadd.f32 %v3171_v48, %v4098_v32  ;;  %v648_v50 = vpop.f32.mrb[5].mxu1 }
 0x25b   :  { %v649_v51 = vadd.f32 %v4098_v32, %v648_v50  ;;  %v3172_v52 = vpop.f32.mrb[6].mxu1  ;;  %3213 = vmatprep.mubr.bf16.mxu0 %v791_v47 }
 0x25c   :  { %v660_v53 = vadd.f32 %v3172_v52, %v4098_v32  ;;  %v651_v54 = vpop.f32.mrb[7].mxu1  ;;  %3214 = vmatmul.mubr.bf16.vlgmr.msra.gmra.mrb[32].mxu0 %v792_v46  ;;  %v765_v56 = vmax.f32 %v657_v49, 0.0 }
 0x25d   :  { %v652_v55 = vadd.f32 %v4098_v32, %v651_v54  ;;  %v763_v58 = vmax.f32 %v649_v51, 0.0 }
 0x25e   :  { %v766_v57 = vmax.f32 %v660_v53, 0.0 }
 0x25f   :  { %v764_v59 = vmax.f32 %v652_v55, 0.0 }
 0x260   :  { %v794_v60 = vpack.c.bf16 %v766_v57, %v765_v56 }
 0x261   :  { %v793_v61 = vpack.c.bf16 %v764_v59, %v763_v58  ;;  %v3175_v62 = vpop.f32.mrb[8].mxu1 }
 0x262   :  { %v673_v63 = vadd.f32 %v3175_v62, %v4098_v32  ;;  %v664_v0 = vpop.f32.mrb[9].mxu1 }
 0x263   :  { %v665_v1 = vadd.f32 %v4098_v32, %v664_v0  ;;  %v3176_v2 = vpop.f32.mrb[10].mxu1  ;;  %3217 = vmatprep.mubr.bf16.mxu0 %v793_v61 }
 0x264   :  { %v676_v3 = vadd.f32 %v3176_v2, %v4098_v32  ;;  %v667_v4 = vpop.f32.mrb[11].mxu1  ;;  %3218 = vmatmul.mubr.bf16.gmra.mrb[36].mxu0 %v794_v60  ;;  %v769_v6 = vmax.f32 %v673_v63, 0.0 }
 0x265   :  { %v668_v5 = vadd.f32 %v4098_v32, %v667_v4  ;;  %v767_v8 = vmax.f32 %v665_v1, 0.0 }
 0x266   :  { %v770_v7 = vmax.f32 %v676_v3, 0.0 }
 0x267   :  { %v768_v9 = vmax.f32 %v668_v5, 0.0 }
 0x268   :  { %v796_v10 = vpack.c.bf16 %v770_v7, %v769_v6 }
 0x269   :  { %v795_v11 = vpack.c.bf16 %v768_v9, %v767_v8  ;;  %v3179_v12 = vpop.f32.mrb[12].mxu1 }
 0x26a   :  { %v689_v13 = vadd.f32 %v3179_v12, %v4098_v32  ;;  %v680_v14 = vpop.f32.mrb[13].mxu1 }
 0x26b   :  { %v681_v15 = vadd.f32 %v4098_v32, %v680_v14  ;;  %v3180_v16 = vpop.f32.mrb[14].mxu1  ;;  %3221 = vmatprep.mubr.bf16.mxu0 %v795_v11 }
 0x26c   :  { %v692_v17 = vadd.f32 %v3180_v16, %v4098_v32  ;;  %v683_v18 = vpop.f32.mrb[15].mxu1  ;;  %3222 = vmatmul.mubr.bf16.gmra.mrb[40].mxu0 %v796_v10  ;;  %v773_v20 = vmax.f32 %v689_v13, 0.0 }
 0x26d   :  { %v684_v19 = vadd.f32 %v4098_v32, %v683_v18  ;;  %v771_v22 = vmax.f32 %v681_v15, 0.0 }
 0x26e   :  { %v774_v21 = vmax.f32 %v692_v17, 0.0 }
 0x26f   :  { %v772_v23 = vmax.f32 %v684_v19, 0.0  ;;  %v3546_v19 = vld [vmem:[#allocation8 + $0xb8] sm:$0xff]  }
 0x270   :  { %v798_v24 = vpack.c.bf16 %v774_v21, %v773_v20  ;;  %3259 = vmatprep.subr.bf16.mxu1 %v3546_v19  ;;  %v3547_v20 = vld [vmem:[#allocation8 + $0xc0] sm:$0xff]   ;;  %v3548_v21 = vld [vmem:[#allocation8 + $0xc8] sm:$0xff]  }
 0x271   :  { %v797_v25 = vpack.c.bf16 %v772_v23, %v771_v22  ;;  %v3183_v26 = vpop.f32.mrb[16].mxu1  ;;  %3260 = vmatpush3.bf16.msra.mxu1 %v3546_v19  ;;  %3293 = vmatprep.subr.bf16.mxu0 %v3547_v20  ;;  %v3549_v22 = vld [vmem:[#allocation8 + $0xd0] sm:$0xff]   ;;  %v3551_v23 = vld [vmem:[#allocation8 + $0xe0] sm:$0xff]  }
 0x272   :  { %v705_v27 = vadd.f32 %v3183_v26, %v4098_v32  ;;  %v696_v28 = vpop.f32.mrb[17].mxu1  ;;  %3294 = vmatpush3.bf16.msra.mxu0 %v3547_v20  ;;  %v4132_v26 = vld [vmem:[#allocation10 + $0x1] ss:$0 sm:$0xff] }
 0x273   :  { %v697_v29 = vadd.f32 %v4098_v32, %v696_v28  ;;  %v3184_v39 = vpop.f32.mrb[18].mxu1  ;;  %3225 = vmatprep.mubr.bf16.mxu0 %v797_v25  ;;  %3295 = vmatprep.subr.bf16.mxu0 %v3548_v21  ;;  %v3553_v25 = vld [vmem:[#allocation8 + $0xf0] sm:$0xff]  }
 0x274   :  { %v708_v30 = vadd.f32 %v3184_v39, %v4098_v32  ;;  %v699_v31 = vpop.f32.mrb[19].mxu1  ;;  %3226 = vmatmul.mubr.bf16.gmra.mrb[44].mxu0 %v798_v24  ;;  %v777_v34 = vmax.f32 %v705_v27, 0.0  ;;  %v3552_v24 = vld [vmem:[#allocation8 + $0xe8] sm:$0xff]  }
 0x275   :  { %v700_v33 = vadd.f32 %v4098_v32, %v699_v31  ;;  %v775_v36 = vmax.f32 %v697_v29, 0.0 }
 0x276   :  { %v778_v35 = vmax.f32 %v708_v30, 0.0  ;;  %3296 = vmatpush3.bf16.msra.mxu0 %v3548_v21 }
 0x277   :  { %v776_v37 = vmax.f32 %v700_v33, 0.0  ;;  %3297 = vmatprep.subr.bf16.mxu0 %v3549_v22 }
 0x278   :  { %v800_v38 = vpack.c.bf16 %v778_v35, %v777_v34 }
 0x279   :  { %v799_v40 = vpack.c.bf16 %v776_v37, %v775_v36  ;;  %v3187_v41 = vpop.f32.mrb[20].mxu1 }
 0x27a   :  { %v721_v42 = vadd.f32 %v3187_v41, %v4098_v32  ;;  %v712_v43 = vpop.f32.mrb[21].mxu1  ;;  %3298 = vmatpush3.bf16.msra.mxu0 %v3549_v22 }
 0x27b   :  { %v713_v44 = vadd.f32 %v4098_v32, %v712_v43  ;;  %v3188_v45 = vpop.f32.mrb[22].mxu1  ;;  %3229 = vmatprep.mubr.bf16.mxu0 %v799_v40 }
 0x27c   :  { %v724_v46 = vadd.f32 %v3188_v45, %v4098_v32  ;;  %v715_v47 = vpop.f32.mrb[23].mxu1  ;;  %3230 = vmatmul.mubr.bf16.gmra.mrb[48].mxu0 %v800_v38  ;;  %v781_v49 = vmax.f32 %v721_v42, 0.0 }
 0x27d   :  { %v716_v48 = vadd.f32 %v4098_v32, %v715_v47  ;;  %v779_v51 = vmax.f32 %v713_v44, 0.0 }
 0x27e   :  { %v782_v50 = vmax.f32 %v724_v46, 0.0 }
 0x27f   :  { %v780_v52 = vmax.f32 %v716_v48, 0.0 }
 0x280   :  { %v802_v53 = vpack.c.bf16 %v782_v50, %v781_v49 }
 0x281   :  { %v801_v54 = vpack.c.bf16 %v780_v52, %v779_v51  ;;  %v3191_v55 = vpop.f32.mrb[24].mxu1 }
 0x282   :  { %v737_v56 = vadd.f32 %v3191_v55, %v4098_v32  ;;  %v728_v57 = vpop.f32.mrb[25].mxu1 }
 0x283   :  { %v729_v58 = vadd.f32 %v4098_v32, %v728_v57  ;;  %v3192_v59 = vpop.f32.mrb[26].mxu1  ;;  %3233 = vmatprep.mubr.bf16.mxu0 %v801_v54 }
 0x284   :  { %v740_v60 = vadd.f32 %v3192_v59, %v4098_v32  ;;  %v731_v61 = vpop.f32.mrb[27].mxu1  ;;  %3234 = vmatmul.mubr.bf16.gmra.mrb[52].mxu0 %v802_v53  ;;  %v785_v63 = vmax.f32 %v737_v56, 0.0 }
 0x285   :  { %v732_v62 = vadd.f32 %v4098_v32, %v731_v61  ;;  %v783_v1 = vmax.f32 %v729_v58, 0.0 }
 0x286   :  { %v786_v0 = vmax.f32 %v740_v60, 0.0 }
 0x287   :  { %v784_v2 = vmax.f32 %v732_v62, 0.0 }
 0x288   :  { %v804_v3 = vpack.c.bf16 %v786_v0, %v785_v63 }
 0x289   :  { %v803_v4 = vpack.c.bf16 %v784_v2, %v783_v1  ;;  %v3195_v5 = vpop.f32.mrb[28].mxu1 }
 0x28a   :  { %v753_v6 = vadd.f32 %v3195_v5, %v4098_v32  ;;  %v744_v7 = vpop.f32.mrb[29].mxu1 }
 0x28b   :  { %v745_v8 = vadd.f32 %v4098_v32, %v744_v7  ;;  %v3196_v9 = vpop.f32.mrb[30].mxu1  ;;  %3237 = vmatprep.mubr.bf16.mxu0 %v803_v4 }
 0x28c   :  { %v756_v10 = vadd.f32 %v3196_v9, %v4098_v32  ;;  %v747_v11 = vpop.f32.mrb[31].mxu1  ;;  %3238 = vmatmul.mubr.bf16.gmra.mrb[56].mxu0 %v804_v3  ;;  %v789_v13 = vmax.f32 %v753_v6, 0.0 }
 0x28d   :  { %v748_v12 = vadd.f32 %v4098_v32, %v747_v11  ;;  %v787_v15 = vmax.f32 %v745_v8, 0.0  ;;  %v3550_v32 = vld [vmem:[#allocation8 + $0xd8] sm:$0xff]  }
 0x28e   :  { %v790_v14 = vmax.f32 %v756_v10, 0.0  ;;  %3299 = vmatprep.subr.bf16.mxu0 %v3550_v32 }
 0x28f   :  { %v788_v16 = vmax.f32 %v748_v12, 0.0  ;;  %3300 = vmatpush3.bf16.msra.mxu0 %v3550_v32 }
 0x290   :  { %v806_v17 = vpack.c.bf16 %v790_v14, %v789_v13  ;;  %3301 = vmatprep.subr.bf16.mxu0 %v3551_v23 }
 0x291   :  { %v805_v18 = vpack.c.bf16 %v788_v16, %v787_v15 }
 0x293   :  { %3241 = vmatprep.mubr.bf16.mxu0 %v805_v18  ;;  %3302 = vmatpush3.bf16.msra.mxu0 %v3551_v23 }
 0x294   :  { %3242 = vmatmul.mubr.bf16.gmra.mrb[60].mxu0 %v806_v17  ;;  %3303 = vmatprep.subr.bf16.mxu0 %v3552_v24 }
 0x297   :  { %3304 = vmatpush3.bf16.msra.mxu0 %v3552_v24 }
 0x298   :  { %3305 = vmatprep.subr.bf16.mxu0 %v3553_v25 }
 0x29b   :  { %3306 = vmatpush3.bf16.msra.mxu0 %v3553_v25 }
 0x32f   :  { %v3215_v27 = vpop.f32.mrb[32].mxu0 }
 0x330   :  { %v923_v28 = vadd.f32 %v3215_v27, %v4132_v26  ;;  %v914_v29 = vpop.f32.mrb[33].mxu0 }
 0x331   :  { %v915_v39 = vadd.f32 %v4132_v26, %v914_v29  ;;  %v3216_v30 = vpop.f32.mrb[34].mxu0 }
 0x332   :  { %v926_v31 = vadd.f32 %v3216_v30, %v4132_v26  ;;  %v917_v33 = vpop.f32.mrb[35].mxu0  ;;  %v1043_v35 = vmax.f32 %v923_v28, 0.0 }
 0x333   :  { %v918_v34 = vadd.f32 %v4132_v26, %v917_v33  ;;  %v1041_v37 = vmax.f32 %v915_v39, 0.0 }
 0x334   :  { %v1044_v36 = vmax.f32 %v926_v31, 0.0 }
 0x335   :  { %v1042_v38 = vmax.f32 %v918_v34, 0.0 }
 0x336   :  { %v1074_v40 = vpack.c.bf16 %v1044_v36, %v1043_v35 }
 0x337   :  { %v1073_v41 = vpack.c.bf16 %v1042_v38, %v1041_v37  ;;  %v3219_v42 = vpop.f32.mrb[36].mxu0 }
 0x338   :  { %v939_v43 = vadd.f32 %v3219_v42, %v4132_v26  ;;  %v930_v44 = vpop.f32.mrb[37].mxu0 }
 0x339   :  { %v931_v45 = vadd.f32 %v4132_v26, %v930_v44  ;;  %v3220_v46 = vpop.f32.mrb[38].mxu0  ;;  %3261 = vmatprep.mubr.bf16.mxu1 %v1073_v41 }
 0x33a   :  { %v942_v47 = vadd.f32 %v3220_v46, %v4132_v26  ;;  %v933_v48 = vpop.f32.mrb[39].mxu0  ;;  %3262 = vmatmul.mubr.bf16.vlgmr.msra.gmra.mrb[32].mxu1 %v1074_v40  ;;  %v1047_v50 = vmax.f32 %v939_v43, 0.0 }
 0x33b   :  { %v934_v49 = vadd.f32 %v4132_v26, %v933_v48  ;;  %v1045_v52 = vmax.f32 %v931_v45, 0.0 }
 0x33c   :  { %v1048_v51 = vmax.f32 %v942_v47, 0.0 }
 0x33d   :  { %v1046_v53 = vmax.f32 %v934_v49, 0.0 }
 0x33e   :  { %v1076_v54 = vpack.c.bf16 %v1048_v51, %v1047_v50 }
 0x33f   :  { %v1075_v55 = vpack.c.bf16 %v1046_v53, %v1045_v52  ;;  %v3223_v56 = vpop.f32.mrb[40].mxu0 }
 0x340   :  { %v955_v57 = vadd.f32 %v3223_v56, %v4132_v26  ;;  %v946_v58 = vpop.f32.mrb[41].mxu0 }
 0x341   :  { %v947_v59 = vadd.f32 %v4132_v26, %v946_v58  ;;  %v3224_v60 = vpop.f32.mrb[42].mxu0  ;;  %3265 = vmatprep.mubr.bf16.mxu1 %v1075_v55 }
 0x342   :  { %v958_v61 = vadd.f32 %v3224_v60, %v4132_v26  ;;  %v949_v62 = vpop.f32.mrb[43].mxu0  ;;  %3266 = vmatmul.mubr.bf16.gmra.mrb[36].mxu1 %v1076_v54  ;;  %v1051_v0 = vmax.f32 %v955_v57, 0.0 }
 0x343   :  { %v950_v63 = vadd.f32 %v4132_v26, %v949_v62  ;;  %v1049_v2 = vmax.f32 %v947_v59, 0.0 }
 0x344   :  { %v1052_v1 = vmax.f32 %v958_v61, 0.0 }
 0x345   :  { %v1050_v3 = vmax.f32 %v950_v63, 0.0 }
 0x346   :  { %v1078_v4 = vpack.c.bf16 %v1052_v1, %v1051_v0 }
 0x347   :  { %v1077_v5 = vpack.c.bf16 %v1050_v3, %v1049_v2  ;;  %v3227_v6 = vpop.f32.mrb[44].mxu0 }
 0x348   :  { %v971_v7 = vadd.f32 %v3227_v6, %v4132_v26  ;;  %v962_v8 = vpop.f32.mrb[45].mxu0 }
 0x349   :  { %v963_v9 = vadd.f32 %v4132_v26, %v962_v8  ;;  %v3228_v10 = vpop.f32.mrb[46].mxu0  ;;  %3269 = vmatprep.mubr.bf16.mxu1 %v1077_v5 }
 0x34a   :  { %v974_v11 = vadd.f32 %v3228_v10, %v4132_v26  ;;  %v965_v12 = vpop.f32.mrb[47].mxu0  ;;  %3270 = vmatmul.mubr.bf16.gmra.mrb[40].mxu1 %v1078_v4  ;;  %v1055_v14 = vmax.f32 %v971_v7, 0.0 }
 0x34b   :  { %v966_v13 = vadd.f32 %v4132_v26, %v965_v12  ;;  %v1053_v16 = vmax.f32 %v963_v9, 0.0 }
 0x34c   :  { %v1056_v15 = vmax.f32 %v974_v11, 0.0 }
 0x34d   :  { %v1054_v17 = vmax.f32 %v966_v13, 0.0  ;;  %v3554_v13 = vld [vmem:[#allocation8 + $0xf8] sm:$0xff]  }
 0x34e   :  { %v1080_v18 = vpack.c.bf16 %v1056_v15, %v1055_v14  ;;  %3307 = vmatprep.subr.bf16.mxu0 %v3554_v13  ;;  %v3555_v14 = vld [vmem:[#allocation8 + $0x100] sm:$0xff]   ;;  %v3556_v15 = vld [vmem:[#allocation8 + $0x108] sm:$0xff]  }
 0x34f   :  { %v1079_v19 = vpack.c.bf16 %v1054_v17, %v1053_v16  ;;  %v3231_v20 = vpop.f32.mrb[48].mxu0  ;;  %3308 = vmatpush3.bf16.msra.mxu0 %v3554_v13  ;;  %3341 = vmatprep.subr.bf16.mxu1 %v3555_v14  ;;  %v3557_v16 = vld [vmem:[#allocation8 + $0x110] sm:$0xff]   ;;  %v3559_v17 = vld [vmem:[#allocation8 + $0x120] sm:$0xff]  }
 0x350   :  { %v987_v21 = vadd.f32 %v3231_v20, %v4132_v26  ;;  %v978_v22 = vpop.f32.mrb[49].mxu0  ;;  %3342 = vmatpush3.bf16.msra.mxu1 %v3555_v14  ;;  %v4166_v20 = vld [vmem:[#allocation10 + $0x2] ss:$0 sm:$0xff] }
 0x351   :  { %v979_v32 = vadd.f32 %v4132_v26, %v978_v22  ;;  %v3232_v23 = vpop.f32.mrb[50].mxu0  ;;  %3273 = vmatprep.mubr.bf16.mxu1 %v1079_v19  ;;  %3343 = vmatprep.subr.bf16.mxu1 %v3556_v15  ;;  %v3561_v19 = vld [vmem:[#allocation8 + $0x130] sm:$0xff]  }
 0x352   :  { %v990_v24 = vadd.f32 %v3232_v23, %v4132_v26  ;;  %v981_v25 = vpop.f32.mrb[51].mxu0  ;;  %3274 = vmatmul.mubr.bf16.gmra.mrb[44].mxu1 %v1080_v18  ;;  %v1059_v28 = vmax.f32 %v987_v21, 0.0  ;;  %v3560_v18 = vld [vmem:[#allocation8 + $0x128] sm:$0xff]  }
 0x353   :  { %v982_v27 = vadd.f32 %v4132_v26, %v981_v25  ;;  %v1057_v39 = vmax.f32 %v979_v32, 0.0 }
 0x354   :  { %v1060_v29 = vmax.f32 %v990_v24, 0.0  ;;  %3344 = vmatpush3.bf16.msra.mxu1 %v3556_v15 }
 0x355   :  { %v1058_v30 = vmax.f32 %v982_v27, 0.0  ;;  %3345 = vmatprep.subr.bf16.mxu1 %v3557_v16 }
 0x356   :  { %v1082_v31 = vpack.c.bf16 %v1060_v29, %v1059_v28 }
 0x357   :  { %v1081_v33 = vpack.c.bf16 %v1058_v30, %v1057_v39  ;;  %v3235_v34 = vpop.f32.mrb[52].mxu0 }
 0x358   :  { %v1003_v35 = vadd.f32 %v3235_v34, %v4132_v26  ;;  %v994_v36 = vpop.f32.mrb[53].mxu0  ;;  %3346 = vmatpush3.bf16.msra.mxu1 %v3557_v16 }
 0x359   :  { %v995_v37 = vadd.f32 %v4132_v26, %v994_v36  ;;  %v3236_v38 = vpop.f32.mrb[54].mxu0  ;;  %3277 = vmatprep.mubr.bf16.mxu1 %v1081_v33 }
 0x35a   :  { %v1006_v40 = vadd.f32 %v3236_v38, %v4132_v26  ;;  %v997_v41 = vpop.f32.mrb[55].mxu0  ;;  %3278 = vmatmul.mubr.bf16.gmra.mrb[48].mxu1 %v1082_v31  ;;  %v1063_v43 = vmax.f32 %v1003_v35, 0.0 }
 0x35b   :  { %v998_v42 = vadd.f32 %v4132_v26, %v997_v41  ;;  %v1061_v45 = vmax.f32 %v995_v37, 0.0 }
 0x35c   :  { %v1064_v44 = vmax.f32 %v1006_v40, 0.0 }
 0x35d   :  { %v1062_v46 = vmax.f32 %v998_v42, 0.0 }
 0x35e   :  { %v1084_v47 = vpack.c.bf16 %v1064_v44, %v1063_v43 }
 0x35f   :  { %v1083_v48 = vpack.c.bf16 %v1062_v46, %v1061_v45  ;;  %v3239_v49 = vpop.f32.mrb[56].mxu0 }
 0x360   :  { %v1019_v50 = vadd.f32 %v3239_v49, %v4132_v26  ;;  %v1010_v51 = vpop.f32.mrb[57].mxu0 }
 0x361   :  { %v1011_v52 = vadd.f32 %v4132_v26, %v1010_v51  ;;  %v3240_v53 = vpop.f32.mrb[58].mxu0  ;;  %3281 = vmatprep.mubr.bf16.mxu1 %v1083_v48 }
 0x362   :  { %v1022_v54 = vadd.f32 %v3240_v53, %v4132_v26  ;;  %v1013_v55 = vpop.f32.mrb[59].mxu0  ;;  %3282 = vmatmul.mubr.bf16.gmra.mrb[52].mxu1 %v1084_v47  ;;  %v1067_v57 = vmax.f32 %v1019_v50, 0.0 }
 0x363   :  { %v1014_v56 = vadd.f32 %v4132_v26, %v1013_v55  ;;  %v1065_v59 = vmax.f32 %v1011_v52, 0.0 }
 0x364   :  { %v1068_v58 = vmax.f32 %v1022_v54, 0.0 }
 0x365   :  { %v1066_v60 = vmax.f32 %v1014_v56, 0.0 }
 0x366   :  { %v1086_v61 = vpack.c.bf16 %v1068_v58, %v1067_v57 }
 0x367   :  { %v1085_v62 = vpack.c.bf16 %v1066_v60, %v1065_v59  ;;  %v3243_v63 = vpop.f32.mrb[60].mxu0 }
 0x368   :  { %v1035_v0 = vadd.f32 %v3243_v63, %v4132_v26  ;;  %v1026_v1 = vpop.f32.mrb[61].mxu0 }
 0x369   :  { %v1027_v2 = vadd.f32 %v4132_v26, %v1026_v1  ;;  %v3244_v3 = vpop.f32.mrb[62].mxu0  ;;  %3285 = vmatprep.mubr.bf16.mxu1 %v1085_v62 }
 0x36a   :  { %v1038_v4 = vadd.f32 %v3244_v3, %v4132_v26  ;;  %v1029_v5 = vpop.f32.mrb[63].mxu0  ;;  %3286 = vmatmul.mubr.bf16.gmra.mrb[56].mxu1 %v1086_v61  ;;  %v1071_v7 = vmax.f32 %v1035_v0, 0.0 }
 0x36b   :  { %v1030_v6 = vadd.f32 %v4132_v26, %v1029_v5  ;;  %v1069_v9 = vmax.f32 %v1027_v2, 0.0  ;;  %v3558_v26 = vld [vmem:[#allocation8 + $0x118] sm:$0xff]  }
 0x36c   :  { %v1072_v8 = vmax.f32 %v1038_v4, 0.0  ;;  %3347 = vmatprep.subr.bf16.mxu1 %v3558_v26 }
 0x36d   :  { %v1070_v10 = vmax.f32 %v1030_v6, 0.0  ;;  %3348 = vmatpush3.bf16.msra.mxu1 %v3558_v26 }
 0x36e   :  { %v1088_v11 = vpack.c.bf16 %v1072_v8, %v1071_v7  ;;  %3349 = vmatprep.subr.bf16.mxu1 %v3559_v17 }
 0x36f   :  { %v1087_v12 = vpack.c.bf16 %v1070_v10, %v1069_v9 }
 0x371   :  { %3289 = vmatprep.mubr.bf16.mxu1 %v1087_v12  ;;  %3350 = vmatpush3.bf16.msra.mxu1 %v3559_v17 }
 0x372   :  { %3290 = vmatmul.mubr.bf16.gmra.mrb[60].mxu1 %v1088_v11  ;;  %3351 = vmatprep.subr.bf16.mxu1 %v3560_v18 }
 0x375   :  { %3352 = vmatpush3.bf16.msra.mxu1 %v3560_v18 }
 0x376   :  { %3353 = vmatprep.subr.bf16.mxu1 %v3561_v19 }
 0x379   :  { %3354 = vmatpush3.bf16.msra.mxu1 %v3561_v19 }
 0x40d   :  { %v3263_v21 = vpop.f32.mrb[32].mxu1 }
 0x40e   :  { %v1205_v22 = vadd.f32 %v3263_v21, %v4166_v20  ;;  %v1196_v32 = vpop.f32.mrb[33].mxu1 }
 0x40f   :  { %v1197_v23 = vadd.f32 %v4166_v20, %v1196_v32  ;;  %v3264_v24 = vpop.f32.mrb[34].mxu1 }
 0x410   :  { %v1208_v25 = vadd.f32 %v3264_v24, %v4166_v20  ;;  %v1199_v27 = vpop.f32.mrb[35].mxu1  ;;  %v1325_v29 = vmax.f32 %v1205_v22, 0.0 }
 0x411   :  { %v1200_v28 = vadd.f32 %v4166_v20, %v1199_v27  ;;  %v1323_v30 = vmax.f32 %v1197_v23, 0.0 }
 0x412   :  { %v1326_v39 = vmax.f32 %v1208_v25, 0.0 }
 0x413   :  { %v1324_v31 = vmax.f32 %v1200_v28, 0.0 }
 0x414   :  { %v1356_v33 = vpack.c.bf16 %v1326_v39, %v1325_v29 }
 0x415   :  { %v1355_v34 = vpack.c.bf16 %v1324_v31, %v1323_v30  ;;  %v3267_v35 = vpop.f32.mrb[36].mxu1 }
 0x416   :  { %v1221_v36 = vadd.f32 %v3267_v35, %v4166_v20  ;;  %v1212_v37 = vpop.f32.mrb[37].mxu1 }
 0x417   :  { %v1213_v38 = vadd.f32 %v4166_v20, %v1212_v37  ;;  %v3268_v40 = vpop.f32.mrb[38].mxu1  ;;  %3309 = vmatprep.mubr.bf16.mxu0 %v1355_v34 }
 0x418   :  { %v1224_v41 = vadd.f32 %v3268_v40, %v4166_v20  ;;  %v1215_v42 = vpop.f32.mrb[39].mxu1  ;;  %3310 = vmatmul.mubr.bf16.vlgmr.msra.gmra.mrb[64].mxu0 %v1356_v33  ;;  %v1329_v44 = vmax.f32 %v1221_v36, 0.0 }
 0x419   :  { %v1216_v43 = vadd.f32 %v4166_v20, %v1215_v42  ;;  %v1327_v46 = vmax.f32 %v1213_v38, 0.0 }
 0x41a   :  { %v1330_v45 = vmax.f32 %v1224_v41, 0.0 }
 0x41b   :  { %v1328_v47 = vmax.f32 %v1216_v43, 0.0 }
 0x41c   :  { %v1358_v48 = vpack.c.bf16 %v1330_v45, %v1329_v44 }
 0x41d   :  { %v1357_v49 = vpack.c.bf16 %v1328_v47, %v1327_v46  ;;  %v3271_v50 = vpop.f32.mrb[40].mxu1 }
 0x41e   :  { %v1237_v51 = vadd.f32 %v3271_v50, %v4166_v20  ;;  %v1228_v52 = vpop.f32.mrb[41].mxu1 }
 0x41f   :  { %v1229_v53 = vadd.f32 %v4166_v20, %v1228_v52  ;;  %v3272_v54 = vpop.f32.mrb[42].mxu1  ;;  %3313 = vmatprep.mubr.bf16.mxu0 %v1357_v49 }
 0x420   :  { %v1240_v55 = vadd.f32 %v3272_v54, %v4166_v20  ;;  %v1231_v56 = vpop.f32.mrb[43].mxu1  ;;  %3314 = vmatmul.mubr.bf16.gmra.mrb[68].mxu0 %v1358_v48  ;;  %v1333_v58 = vmax.f32 %v1237_v51, 0.0 }
 0x421   :  { %v1232_v57 = vadd.f32 %v4166_v20, %v1231_v56  ;;  %v1331_v60 = vmax.f32 %v1229_v53, 0.0 }
 0x422   :  { %v1334_v59 = vmax.f32 %v1240_v55, 0.0 }
 0x423   :  { %v1332_v61 = vmax.f32 %v1232_v57, 0.0 }
 0x424   :  { %v1360_v62 = vpack.c.bf16 %v1334_v59, %v1333_v58 }
 0x425   :  { %v1359_v63 = vpack.c.bf16 %v1332_v61, %v1331_v60  ;;  %v3275_v0 = vpop.f32.mrb[44].mxu1 }
 0x426   :  { %v1253_v1 = vadd.f32 %v3275_v0, %v4166_v20  ;;  %v1244_v2 = vpop.f32.mrb[45].mxu1 }
 0x427   :  { %v1245_v3 = vadd.f32 %v4166_v20, %v1244_v2  ;;  %v3276_v4 = vpop.f32.mrb[46].mxu1  ;;  %3317 = vmatprep.mubr.bf16.mxu0 %v1359_v63 }
 0x428   :  { %v1256_v5 = vadd.f32 %v3276_v4, %v4166_v20  ;;  %v1247_v6 = vpop.f32.mrb[47].mxu1  ;;  %3318 = vmatmul.mubr.bf16.gmra.mrb[72].mxu0 %v1360_v62  ;;  %v1337_v8 = vmax.f32 %v1253_v1, 0.0 }
 0x429   :  { %v1248_v7 = vadd.f32 %v4166_v20, %v1247_v6  ;;  %v1335_v10 = vmax.f32 %v1245_v3, 0.0 }
 0x42a   :  { %v1338_v9 = vmax.f32 %v1256_v5, 0.0 }
 0x42b   :  { %v1336_v11 = vmax.f32 %v1248_v7, 0.0  ;;  %v3562_v7 = vld [vmem:[#allocation8 + $0x138] sm:$0xff]  }
 0x42c   :  { %v1362_v12 = vpack.c.bf16 %v1338_v9, %v1337_v8  ;;  %3355 = vmatprep.subr.bf16.mxu1 %v3562_v7  ;;  %v3563_v8 = vld [vmem:[#allocation8 + $0x140] sm:$0xff]   ;;  %v3564_v9 = vld [vmem:[#allocation8 + $0x148] sm:$0xff]  }
 0x42d   :  { %v1361_v13 = vpack.c.bf16 %v1336_v11, %v1335_v10  ;;  %v3279_v14 = vpop.f32.mrb[48].mxu1  ;;  %3356 = vmatpush3.bf16.msra.mxu1 %v3562_v7  ;;  %3389 = vmatprep.subr.bf16.mxu0 %v3563_v8  ;;  %v3565_v10 = vld [vmem:[#allocation8 + $0x150] sm:$0xff]   ;;  %v3567_v11 = vld [vmem:[#allocation8 + $0x160] sm:$0xff]  }
 0x42e   :  { %v1269_v15 = vadd.f32 %v3279_v14, %v4166_v20  ;;  %v1260_v16 = vpop.f32.mrb[49].mxu1  ;;  %3390 = vmatpush3.bf16.msra.mxu0 %v3563_v8  ;;  %v4200_v14 = vld [vmem:[#allocation10 + $0x3] ss:$0 sm:$0xff] }
 0x42f   :  { %v1261_v26 = vadd.f32 %v4166_v20, %v1260_v16  ;;  %v3280_v17 = vpop.f32.mrb[50].mxu1  ;;  %3321 = vmatprep.mubr.bf16.mxu0 %v1361_v13  ;;  %3391 = vmatprep.subr.bf16.mxu0 %v3564_v9  ;;  %v3569_v13 = vld [vmem:[#allocation8 + $0x170] sm:$0xff]  }
 0x430   :  { %v1272_v18 = vadd.f32 %v3280_v17, %v4166_v20  ;;  %v1263_v19 = vpop.f32.mrb[51].mxu1  ;;  %3322 = vmatmul.mubr.bf16.gmra.mrb[76].mxu0 %v1362_v12  ;;  %v1341_v22 = vmax.f32 %v1269_v15, 0.0  ;;  %v3568_v12 = vld [vmem:[#allocation8 + $0x168] sm:$0xff]  }
 0x431   :  { %v1264_v21 = vadd.f32 %v4166_v20, %v1263_v19  ;;  %v1339_v23 = vmax.f32 %v1261_v26, 0.0 }
 0x432   :  { %v1342_v32 = vmax.f32 %v1272_v18, 0.0  ;;  %3392 = vmatpush3.bf16.msra.mxu0 %v3564_v9 }
 0x433   :  { %v1340_v24 = vmax.f32 %v1264_v21, 0.0  ;;  %3393 = vmatprep.subr.bf16.mxu0 %v3565_v10 }
 0x434   :  { %v1364_v25 = vpack.c.bf16 %v1342_v32, %v1341_v22 }
 0x435   :  { %v1363_v27 = vpack.c.bf16 %v1340_v24, %v1339_v23  ;;  %v3283_v28 = vpop.f32.mrb[52].mxu1 }
 0x436   :  { %v1285_v29 = vadd.f32 %v3283_v28, %v4166_v20  ;;  %v1276_v39 = vpop.f32.mrb[53].mxu1  ;;  %3394 = vmatpush3.bf16.msra.mxu0 %v3565_v10 }
 0x437   :  { %v1277_v30 = vadd.f32 %v4166_v20, %v1276_v39  ;;  %v3284_v31 = vpop.f32.mrb[54].mxu1  ;;  %3325 = vmatprep.mubr.bf16.mxu0 %v1363_v27 }
 0x438   :  { %v1288_v33 = vadd.f32 %v3284_v31, %v4166_v20  ;;  %v1279_v34 = vpop.f32.mrb[55].mxu1  ;;  %3326 = vmatmul.mubr.bf16.gmra.mrb[80].mxu0 %v1364_v25  ;;  %v1345_v36 = vmax.f32 %v1285_v29, 0.0 }
 0x439   :  { %v1280_v35 = vadd.f32 %v4166_v20, %v1279_v34  ;;  %v1343_v38 = vmax.f32 %v1277_v30, 0.0 }
 0x43a   :  { %v1346_v37 = vmax.f32 %v1288_v33, 0.0 }
 0x43b   :  { %v1344_v40 = vmax.f32 %v1280_v35, 0.0 }
 0x43c   :  { %v1366_v41 = vpack.c.bf16 %v1346_v37, %v1345_v36 }
 0x43d   :  { %v1365_v42 = vpack.c.bf16 %v1344_v40, %v1343_v38  ;;  %v3287_v43 = vpop.f32.mrb[56].mxu1 }
 0x43e   :  { %v1301_v44 = vadd.f32 %v3287_v43, %v4166_v20  ;;  %v1292_v45 = vpop.f32.mrb[57].mxu1 }
 0x43f   :  { %v1293_v46 = vadd.f32 %v4166_v20, %v1292_v45  ;;  %v3288_v47 = vpop.f32.mrb[58].mxu1  ;;  %3329 = vmatprep.mubr.bf16.mxu0 %v1365_v42 }
 0x440   :  { %v1304_v48 = vadd.f32 %v3288_v47, %v4166_v20  ;;  %v1295_v49 = vpop.f32.mrb[59].mxu1  ;;  %3330 = vmatmul.mubr.bf16.gmra.mrb[84].mxu0 %v1366_v41  ;;  %v1349_v51 = vmax.f32 %v1301_v44, 0.0 }
 0x441   :  { %v1296_v50 = vadd.f32 %v4166_v20, %v1295_v49  ;;  %v1347_v53 = vmax.f32 %v1293_v46, 0.0 }
 0x442   :  { %v1350_v52 = vmax.f32 %v1304_v48, 0.0 }
 0x443   :  { %v1348_v54 = vmax.f32 %v1296_v50, 0.0 }
 0x444   :  { %v1368_v55 = vpack.c.bf16 %v1350_v52, %v1349_v51 }
 0x445   :  { %v1367_v56 = vpack.c.bf16 %v1348_v54, %v1347_v53  ;;  %v3291_v57 = vpop.f32.mrb[60].mxu1 }
 0x446   :  { %v1317_v58 = vadd.f32 %v3291_v57, %v4166_v20  ;;  %v1308_v59 = vpop.f32.mrb[61].mxu1 }
 0x447   :  { %v1309_v60 = vadd.f32 %v4166_v20, %v1308_v59  ;;  %v3292_v61 = vpop.f32.mrb[62].mxu1  ;;  %3333 = vmatprep.mubr.bf16.mxu0 %v1367_v56 }
 0x448   :  { %v1320_v62 = vadd.f32 %v3292_v61, %v4166_v20  ;;  %v1311_v63 = vpop.f32.mrb[63].mxu1  ;;  %3334 = vmatmul.mubr.bf16.gmra.mrb[88].mxu0 %v1368_v55  ;;  %v1353_v1 = vmax.f32 %v1317_v58, 0.0 }
 0x449   :  { %v1312_v0 = vadd.f32 %v4166_v20, %v1311_v63  ;;  %v1351_v3 = vmax.f32 %v1309_v60, 0.0  ;;  %v3566_v20 = vld [vmem:[#allocation8 + $0x158] sm:$0xff]  }
 0x44a   :  { %v1354_v2 = vmax.f32 %v1320_v62, 0.0  ;;  %3395 = vmatprep.subr.bf16.mxu0 %v3566_v20 }
 0x44b   :  { %v1352_v4 = vmax.f32 %v1312_v0, 0.0  ;;  %3396 = vmatpush3.bf16.msra.mxu0 %v3566_v20 }
 0x44c   :  { %v1370_v5 = vpack.c.bf16 %v1354_v2, %v1353_v1  ;;  %3397 = vmatprep.subr.bf16.mxu0 %v3567_v11 }
 0x44d   :  { %v1369_v6 = vpack.c.bf16 %v1352_v4, %v1351_v3 }
 0x44f   :  { %3337 = vmatprep.mubr.bf16.mxu0 %v1369_v6  ;;  %3398 = vmatpush3.bf16.msra.mxu0 %v3567_v11 }
 0x450   :  { %3338 = vmatmul.mubr.bf16.gmra.mrb[92].mxu0 %v1370_v5  ;;  %3399 = vmatprep.subr.bf16.mxu0 %v3568_v12 }
 0x453   :  { %3400 = vmatpush3.bf16.msra.mxu0 %v3568_v12 }
 0x454   :  { %3401 = vmatprep.subr.bf16.mxu0 %v3569_v13 }
 0x457   :  { %3402 = vmatpush3.bf16.msra.mxu0 %v3569_v13 }
 0x4eb   :  { %v3311_v15 = vpop.f32.mrb[64].mxu0 }
 0x4ec   :  { %v1487_v16 = vadd.f32 %v3311_v15, %v4200_v14  ;;  %v1478_v26 = vpop.f32.mrb[65].mxu0 }
 0x4ed   :  { %v1479_v17 = vadd.f32 %v4200_v14, %v1478_v26  ;;  %v3312_v18 = vpop.f32.mrb[66].mxu0 }
 0x4ee   :  { %v1490_v19 = vadd.f32 %v3312_v18, %v4200_v14  ;;  %v1481_v21 = vpop.f32.mrb[67].mxu0  ;;  %v1607_v32 = vmax.f32 %v1487_v16, 0.0 }
 0x4ef   :  { %v1482_v22 = vadd.f32 %v4200_v14, %v1481_v21  ;;  %v1605_v24 = vmax.f32 %v1479_v17, 0.0 }
 0x4f0   :  { %v1608_v23 = vmax.f32 %v1490_v19, 0.0 }
 0x4f1   :  { %v1606_v25 = vmax.f32 %v1482_v22, 0.0 }
 0x4f2   :  { %v1638_v27 = vpack.c.bf16 %v1608_v23, %v1607_v32 }
 0x4f3   :  { %v1637_v28 = vpack.c.bf16 %v1606_v25, %v1605_v24  ;;  %v3315_v29 = vpop.f32.mrb[68].mxu0 }
 0x4f4   :  { %v1503_v39 = vadd.f32 %v3315_v29, %v4200_v14  ;;  %v1494_v30 = vpop.f32.mrb[69].mxu0 }
 0x4f5   :  { %v1495_v31 = vadd.f32 %v4200_v14, %v1494_v30  ;;  %v3316_v33 = vpop.f32.mrb[70].mxu0  ;;  %3357 = vmatprep.mubr.bf16.mxu1 %v1637_v28 }
 0x4f6   :  { %v1506_v34 = vadd.f32 %v3316_v33, %v4200_v14  ;;  %v1497_v35 = vpop.f32.mrb[71].mxu0  ;;  %3358 = vmatmul.mubr.bf16.vlgmr.msra.gmra.mrb[64].mxu1 %v1638_v27  ;;  %v1611_v37 = vmax.f32 %v1503_v39, 0.0 }
 0x4f7   :  { %v1498_v36 = vadd.f32 %v4200_v14, %v1497_v35  ;;  %v1609_v40 = vmax.f32 %v1495_v31, 0.0 }
 0x4f8   :  { %v1612_v38 = vmax.f32 %v1506_v34, 0.0 }
 0x4f9   :  { %v1610_v41 = vmax.f32 %v1498_v36, 0.0 }
 0x4fa   :  { %v1640_v42 = vpack.c.bf16 %v1612_v38, %v1611_v37 }
 0x4fb   :  { %v1639_v43 = vpack.c.bf16 %v1610_v41, %v1609_v40  ;;  %v3319_v44 = vpop.f32.mrb[72].mxu0 }
 0x4fc   :  { %v1519_v45 = vadd.f32 %v3319_v44, %v4200_v14  ;;  %v1510_v46 = vpop.f32.mrb[73].mxu0 }
 0x4fd   :  { %v1511_v47 = vadd.f32 %v4200_v14, %v1510_v46  ;;  %v3320_v48 = vpop.f32.mrb[74].mxu0  ;;  %3361 = vmatprep.mubr.bf16.mxu1 %v1639_v43 }
 0x4fe   :  { %v1522_v49 = vadd.f32 %v3320_v48, %v4200_v14  ;;  %v1513_v50 = vpop.f32.mrb[75].mxu0  ;;  %3362 = vmatmul.mubr.bf16.gmra.mrb[68].mxu1 %v1640_v42  ;;  %v1615_v52 = vmax.f32 %v1519_v45, 0.0 }
 0x4ff   :  { %v1514_v51 = vadd.f32 %v4200_v14, %v1513_v50  ;;  %v1613_v54 = vmax.f32 %v1511_v47, 0.0 }
 0x500   :  { %v1616_v53 = vmax.f32 %v1522_v49, 0.0 }
 0x501   :  { %v1614_v55 = vmax.f32 %v1514_v51, 0.0 }
 0x502   :  { %v1642_v56 = vpack.c.bf16 %v1616_v53, %v1615_v52 }
 0x503   :  { %v1641_v57 = vpack.c.bf16 %v1614_v55, %v1613_v54  ;;  %v3323_v58 = vpop.f32.mrb[76].mxu0 }
 0x504   :  { %v1535_v59 = vadd.f32 %v3323_v58, %v4200_v14  ;;  %v1526_v60 = vpop.f32.mrb[77].mxu0 }
 0x505   :  { %v1527_v61 = vadd.f32 %v4200_v14, %v1526_v60  ;;  %v3324_v62 = vpop.f32.mrb[78].mxu0  ;;  %3365 = vmatprep.mubr.bf16.mxu1 %v1641_v57 }
 0x506   :  { %v1538_v63 = vadd.f32 %v3324_v62, %v4200_v14  ;;  %v1529_v0 = vpop.f32.mrb[79].mxu0  ;;  %3366 = vmatmul.mubr.bf16.gmra.mrb[72].mxu1 %v1642_v56  ;;  %v1619_v2 = vmax.f32 %v1535_v59, 0.0 }
 0x507   :  { %v1530_v1 = vadd.f32 %v4200_v14, %v1529_v0  ;;  %v1617_v4 = vmax.f32 %v1527_v61, 0.0 }
 0x508   :  { %v1620_v3 = vmax.f32 %v1538_v63, 0.0 }
 0x509   :  { %v1618_v5 = vmax.f32 %v1530_v1, 0.0  ;;  %v3570_v1 = vld [vmem:[#allocation8 + $0x178] sm:$0xff]  }
 0x50a   :  { %v1644_v6 = vpack.c.bf16 %v1620_v3, %v1619_v2  ;;  %3403 = vmatprep.subr.bf16.mxu0 %v3570_v1  ;;  %v3571_v2 = vld [vmem:[#allocation11] sm:$0xff]   ;;  %v3572_v3 = vld [vmem:[#allocation11 + $0x8] sm:$0xff]  }
 0x50b   :  { %v1643_v7 = vpack.c.bf16 %v1618_v5, %v1617_v4  ;;  %v3327_v8 = vpop.f32.mrb[80].mxu0  ;;  %3404 = vmatpush3.bf16.msra.mxu0 %v3570_v1  ;;  %3437 = vmatprep.subr.bf16.mxu1 %v3571_v2  ;;  %v3573_v4 = vld [vmem:[#allocation11 + $0x10] sm:$0xff]   ;;  %v3575_v5 = vld [vmem:[#allocation11 + $0x20] sm:$0xff]  }
 0x50c   :  { %v1551_v9 = vadd.f32 %v3327_v8, %v4200_v14  ;;  %v1542_v10 = vpop.f32.mrb[81].mxu0  ;;  %3438 = vmatpush3.bf16.msra.mxu1 %v3571_v2  ;;  %v4234_v8 = vld [vmem:[#allocation10 + $0x4] ss:$0 sm:$0xff] }
 0x50d   :  { %v1543_v20 = vadd.f32 %v4200_v14, %v1542_v10  ;;  %v3328_v11 = vpop.f32.mrb[82].mxu0  ;;  %3369 = vmatprep.mubr.bf16.mxu1 %v1643_v7  ;;  %3439 = vmatprep.subr.bf16.mxu1 %v3572_v3  ;;  %v3577_v7 = vld [vmem:[#allocation11 + $0x30] sm:$0xff]  }
 0x50e   :  { %v1554_v12 = vadd.f32 %v3328_v11, %v4200_v14  ;;  %v1545_v13 = vpop.f32.mrb[83].mxu0  ;;  %3370 = vmatmul.mubr.bf16.gmra.mrb[76].mxu1 %v1644_v6  ;;  %v1623_v16 = vmax.f32 %v1551_v9, 0.0  ;;  %v3576_v6 = vld [vmem:[#allocation11 + $0x28] sm:$0xff]  }
 0x50f   :  { %v1546_v15 = vadd.f32 %v4200_v14, %v1545_v13  ;;  %v1621_v17 = vmax.f32 %v1543_v20, 0.0 }
 0x510   :  { %v1624_v26 = vmax.f32 %v1554_v12, 0.0  ;;  %3440 = vmatpush3.bf16.msra.mxu1 %v3572_v3 }
 0x511   :  { %v1622_v18 = vmax.f32 %v1546_v15, 0.0  ;;  %3441 = vmatprep.subr.bf16.mxu1 %v3573_v4 }
 0x512   :  { %v1646_v19 = vpack.c.bf16 %v1624_v26, %v1623_v16 }
 0x513   :  { %v1645_v21 = vpack.c.bf16 %v1622_v18, %v1621_v17  ;;  %v3331_v22 = vpop.f32.mrb[84].mxu0 }
 0x514   :  { %v1567_v32 = vadd.f32 %v3331_v22, %v4200_v14  ;;  %v1558_v23 = vpop.f32.mrb[85].mxu0  ;;  %3442 = vmatpush3.bf16.msra.mxu1 %v3573_v4 }
 0x515   :  { %v1559_v24 = vadd.f32 %v4200_v14, %v1558_v23  ;;  %v3332_v25 = vpop.f32.mrb[86].mxu0  ;;  %3373 = vmatprep.mubr.bf16.mxu1 %v1645_v21 }
 0x516   :  { %v1570_v27 = vadd.f32 %v3332_v25, %v4200_v14  ;;  %v1561_v28 = vpop.f32.mrb[87].mxu0  ;;  %3374 = vmatmul.mubr.bf16.gmra.mrb[80].mxu1 %v1646_v19  ;;  %v1627_v39 = vmax.f32 %v1567_v32, 0.0 }
 0x517   :  { %v1562_v29 = vadd.f32 %v4200_v14, %v1561_v28  ;;  %v1625_v31 = vmax.f32 %v1559_v24, 0.0 }
 0x518   :  { %v1628_v30 = vmax.f32 %v1570_v27, 0.0 }
 0x519   :  { %v1626_v33 = vmax.f32 %v1562_v29, 0.0 }
 0x51a   :  { %v1648_v34 = vpack.c.bf16 %v1628_v30, %v1627_v39 }
 0x51b   :  { %v1647_v35 = vpack.c.bf16 %v1626_v33, %v1625_v31  ;;  %v3335_v36 = vpop.f32.mrb[88].mxu0 }
 0x51c   :  { %v1583_v37 = vadd.f32 %v3335_v36, %v4200_v14  ;;  %v1574_v38 = vpop.f32.mrb[89].mxu0 }
 0x51d   :  { %v1575_v40 = vadd.f32 %v4200_v14, %v1574_v38  ;;  %v3336_v41 = vpop.f32.mrb[90].mxu0  ;;  %3377 = vmatprep.mubr.bf16.mxu1 %v1647_v35 }
 0x51e   :  { %v1586_v42 = vadd.f32 %v3336_v41, %v4200_v14  ;;  %v1577_v43 = vpop.f32.mrb[91].mxu0  ;;  %3378 = vmatmul.mubr.bf16.gmra.mrb[84].mxu1 %v1648_v34  ;;  %v1631_v45 = vmax.f32 %v1583_v37, 0.0 }
 0x51f   :  { %v1578_v44 = vadd.f32 %v4200_v14, %v1577_v43  ;;  %v1629_v47 = vmax.f32 %v1575_v40, 0.0 }
 0x520   :  { %v1632_v46 = vmax.f32 %v1586_v42, 0.0 }
 0x521   :  { %v1630_v48 = vmax.f32 %v1578_v44, 0.0 }
 0x522   :  { %v1650_v49 = vpack.c.bf16 %v1632_v46, %v1631_v45 }
 0x523   :  { %v1649_v50 = vpack.c.bf16 %v1630_v48, %v1629_v47  ;;  %v3339_v51 = vpop.f32.mrb[92].mxu0 }
 0x524   :  { %v1599_v52 = vadd.f32 %v3339_v51, %v4200_v14  ;;  %v1590_v53 = vpop.f32.mrb[93].mxu0 }
 0x525   :  { %v1591_v54 = vadd.f32 %v4200_v14, %v1590_v53  ;;  %v3340_v55 = vpop.f32.mrb[94].mxu0  ;;  %3381 = vmatprep.mubr.bf16.mxu1 %v1649_v50 }
 0x526   :  { %v1602_v56 = vadd.f32 %v3340_v55, %v4200_v14  ;;  %v1593_v57 = vpop.f32.mrb[95].mxu0  ;;  %3382 = vmatmul.mubr.bf16.gmra.mrb[88].mxu1 %v1650_v49  ;;  %v1635_v59 = vmax.f32 %v1599_v52, 0.0 }
 0x527   :  { %v1594_v58 = vadd.f32 %v4200_v14, %v1593_v57  ;;  %v1633_v61 = vmax.f32 %v1591_v54, 0.0  ;;  %v3574_v14 = vld [vmem:[#allocation11 + $0x18] sm:$0xff]  }
 0x528   :  { %v1636_v60 = vmax.f32 %v1602_v56, 0.0  ;;  %3443 = vmatprep.subr.bf16.mxu1 %v3574_v14 }
 0x529   :  { %v1634_v62 = vmax.f32 %v1594_v58, 0.0  ;;  %3444 = vmatpush3.bf16.msra.mxu1 %v3574_v14 }
 0x52a   :  { %v1652_v63 = vpack.c.bf16 %v1636_v60, %v1635_v59  ;;  %3445 = vmatprep.subr.bf16.mxu1 %v3575_v5 }
 0x52b   :  { %v1651_v0 = vpack.c.bf16 %v1634_v62, %v1633_v61 }
 0x52d   :  { %3385 = vmatprep.mubr.bf16.mxu1 %v1651_v0  ;;  %3446 = vmatpush3.bf16.msra.mxu1 %v3575_v5 }
 0x52e   :  { %3386 = vmatmul.mubr.bf16.gmra.mrb[92].mxu1 %v1652_v63  ;;  %3447 = vmatprep.subr.bf16.mxu1 %v3576_v6 }
 0x531   :  { %3448 = vmatpush3.bf16.msra.mxu1 %v3576_v6 }
 0x532   :  { %3449 = vmatprep.subr.bf16.mxu1 %v3577_v7 }
 0x535   :  { %3450 = vmatpush3.bf16.msra.mxu1 %v3577_v7 }
 0x5c9   :  { %v3359_v9 = vpop.f32.mrb[64].mxu1 }
 0x5ca   :  { %v1769_v10 = vadd.f32 %v3359_v9, %v4234_v8  ;;  %v1760_v20 = vpop.f32.mrb[65].mxu1 }
 0x5cb   :  { %v1761_v11 = vadd.f32 %v4234_v8, %v1760_v20  ;;  %v3360_v12 = vpop.f32.mrb[66].mxu1 }
 0x5cc   :  { %v1772_v13 = vadd.f32 %v3360_v12, %v4234_v8  ;;  %v1763_v15 = vpop.f32.mrb[67].mxu1  ;;  %v1889_v26 = vmax.f32 %v1769_v10, 0.0 }
 0x5cd   :  { %v1764_v16 = vadd.f32 %v4234_v8, %v1763_v15  ;;  %v1887_v18 = vmax.f32 %v1761_v11, 0.0 }
 0x5ce   :  { %v1890_v17 = vmax.f32 %v1772_v13, 0.0 }
 0x5cf   :  { %v1888_v19 = vmax.f32 %v1764_v16, 0.0 }
 0x5d0   :  { %v1920_v21 = vpack.c.bf16 %v1890_v17, %v1889_v26 }
 0x5d1   :  { %v1919_v22 = vpack.c.bf16 %v1888_v19, %v1887_v18  ;;  %v3363_v32 = vpop.f32.mrb[68].mxu1 }
 0x5d2   :  { %v1785_v23 = vadd.f32 %v3363_v32, %v4234_v8  ;;  %v1776_v24 = vpop.f32.mrb[69].mxu1 }
 0x5d3   :  { %v1777_v25 = vadd.f32 %v4234_v8, %v1776_v24  ;;  %v3364_v27 = vpop.f32.mrb[70].mxu1  ;;  %3405 = vmatprep.mubr.bf16.mxu0 %v1919_v22 }
 0x5d4   :  { %v1788_v28 = vadd.f32 %v3364_v27, %v4234_v8  ;;  %v1779_v29 = vpop.f32.mrb[71].mxu1  ;;  %3406 = vmatmul.mubr.bf16.vlgmr.msra.gmra.mrb[96].mxu0 %v1920_v21  ;;  %v1893_v30 = vmax.f32 %v1785_v23, 0.0 }
 0x5d5   :  { %v1780_v39 = vadd.f32 %v4234_v8, %v1779_v29  ;;  %v1891_v33 = vmax.f32 %v1777_v25, 0.0 }
 0x5d6   :  { %v1894_v31 = vmax.f32 %v1788_v28, 0.0 }
 0x5d7   :  { %v1892_v34 = vmax.f32 %v1780_v39, 0.0 }
 0x5d8   :  { %v1922_v35 = vpack.c.bf16 %v1894_v31, %v1893_v30 }
 0x5d9   :  { %v1921_v36 = vpack.c.bf16 %v1892_v34, %v1891_v33  ;;  %v3367_v37 = vpop.f32.mrb[72].mxu1 }
 0x5da   :  { %v1801_v38 = vadd.f32 %v3367_v37, %v4234_v8  ;;  %v1792_v40 = vpop.f32.mrb[73].mxu1 }
 0x5db   :  { %v1793_v41 = vadd.f32 %v4234_v8, %v1792_v40  ;;  %v3368_v42 = vpop.f32.mrb[74].mxu1  ;;  %3409 = vmatprep.mubr.bf16.mxu0 %v1921_v36 }
 0x5dc   :  { %v1804_v43 = vadd.f32 %v3368_v42, %v4234_v8  ;;  %v1795_v44 = vpop.f32.mrb[75].mxu1  ;;  %3410 = vmatmul.mubr.bf16.gmra.mrb[100].mxu0 %v1922_v35  ;;  %v1897_v46 = vmax.f32 %v1801_v38, 0.0 }
 0x5dd   :  { %v1796_v45 = vadd.f32 %v4234_v8, %v1795_v44  ;;  %v1895_v48 = vmax.f32 %v1793_v41, 0.0 }
 0x5de   :  { %v1898_v47 = vmax.f32 %v1804_v43, 0.0 }
 0x5df   :  { %v1896_v49 = vmax.f32 %v1796_v45, 0.0 }
 0x5e0   :  { %v1924_v50 = vpack.c.bf16 %v1898_v47, %v1897_v46 }
 0x5e1   :  { %v1923_v51 = vpack.c.bf16 %v1896_v49, %v1895_v48  ;;  %v3371_v52 = vpop.f32.mrb[76].mxu1 }
 0x5e2   :  { %v1817_v53 = vadd.f32 %v3371_v52, %v4234_v8  ;;  %v1808_v54 = vpop.f32.mrb[77].mxu1 }
 0x5e3   :  { %v1809_v55 = vadd.f32 %v4234_v8, %v1808_v54  ;;  %v3372_v56 = vpop.f32.mrb[78].mxu1  ;;  %3413 = vmatprep.mubr.bf16.mxu0 %v1923_v51 }
 0x5e4   :  { %v1820_v57 = vadd.f32 %v3372_v56, %v4234_v8  ;;  %v1811_v58 = vpop.f32.mrb[79].mxu1  ;;  %3414 = vmatmul.mubr.bf16.gmra.mrb[104].mxu0 %v1924_v50  ;;  %v1901_v60 = vmax.f32 %v1817_v53, 0.0 }
 0x5e5   :  { %v1812_v59 = vadd.f32 %v4234_v8, %v1811_v58  ;;  %v1899_v62 = vmax.f32 %v1809_v55, 0.0 }
 0x5e6   :  { %v1902_v61 = vmax.f32 %v1820_v57, 0.0 }
 0x5e7   :  { %v1900_v63 = vmax.f32 %v1812_v59, 0.0  ;;  %v3578_v59 = vld [vmem:[#allocation11 + $0x38] sm:$0xff]  }
 0x5e8   :  { %v1926_v0 = vpack.c.bf16 %v1902_v61, %v1901_v60  ;;  %3451 = vmatprep.subr.bf16.mxu1 %v3578_v59  ;;  %v4268_v60 = vld [vmem:[#allocation10 + $0x5] ss:$0 sm:$0xff] }
 0x5e9   :  { %v1925_v1 = vpack.c.bf16 %v1900_v63, %v1899_v62  ;;  %v3375_v2 = vpop.f32.mrb[80].mxu1  ;;  %3452 = vmatpush3.bf16.msra.mxu1 %v3578_v59 }
 0x5ea   :  { %v1833_v3 = vadd.f32 %v3375_v2, %v4234_v8  ;;  %v1824_v4 = vpop.f32.mrb[81].mxu1 }
 0x5eb   :  { %v1825_v14 = vadd.f32 %v4234_v8, %v1824_v4  ;;  %v3376_v5 = vpop.f32.mrb[82].mxu1  ;;  %3417 = vmatprep.mubr.bf16.mxu0 %v1925_v1 }
 0x5ec   :  { %v1836_v6 = vadd.f32 %v3376_v5, %v4234_v8  ;;  %v1827_v7 = vpop.f32.mrb[83].mxu1  ;;  %3418 = vmatmul.mubr.bf16.gmra.mrb[108].mxu0 %v1926_v0  ;;  %v1905_v10 = vmax.f32 %v1833_v3, 0.0 }
 0x5ed   :  { %v1828_v9 = vadd.f32 %v4234_v8, %v1827_v7  ;;  %v1903_v11 = vmax.f32 %v1825_v14, 0.0 }
 0x5ee   :  { %v1906_v20 = vmax.f32 %v1836_v6, 0.0 }
 0x5ef   :  { %v1904_v12 = vmax.f32 %v1828_v9, 0.0 }
 0x5f0   :  { %v1928_v13 = vpack.c.bf16 %v1906_v20, %v1905_v10 }
 0x5f1   :  { %v1927_v15 = vpack.c.bf16 %v1904_v12, %v1903_v11  ;;  %v3379_v16 = vpop.f32.mrb[84].mxu1 }
 0x5f2   :  { %v1849_v26 = vadd.f32 %v3379_v16, %v4234_v8  ;;  %v1840_v17 = vpop.f32.mrb[85].mxu1 }
 0x5f3   :  { %v1841_v18 = vadd.f32 %v4234_v8, %v1840_v17  ;;  %v3380_v19 = vpop.f32.mrb[86].mxu1  ;;  %3421 = vmatprep.mubr.bf16.mxu0 %v1927_v15 }
 0x5f4   :  { %v1852_v21 = vadd.f32 %v3380_v19, %v4234_v8  ;;  %v1843_v22 = vpop.f32.mrb[87].mxu1  ;;  %3422 = vmatmul.mubr.bf16.gmra.mrb[112].mxu0 %v1928_v13  ;;  %v1909_v23 = vmax.f32 %v1849_v26, 0.0 }
 0x5f5   :  { %v1844_v32 = vadd.f32 %v4234_v8, %v1843_v22  ;;  %v1907_v25 = vmax.f32 %v1841_v18, 0.0 }
 0x5f6   :  { %v1910_v24 = vmax.f32 %v1852_v21, 0.0 }
 0x5f7   :  { %v1908_v27 = vmax.f32 %v1844_v32, 0.0 }
 0x5f8   :  { %v1930_v28 = vpack.c.bf16 %v1910_v24, %v1909_v23 }
 0x5f9   :  { %v1929_v29 = vpack.c.bf16 %v1908_v27, %v1907_v25  ;;  %v3383_v39 = vpop.f32.mrb[88].mxu1 }
 0x5fa   :  { %v1865_v30 = vadd.f32 %v3383_v39, %v4234_v8  ;;  %v1856_v31 = vpop.f32.mrb[89].mxu1 }
 0x5fb   :  { %v1857_v33 = vadd.f32 %v4234_v8, %v1856_v31  ;;  %v3384_v34 = vpop.f32.mrb[90].mxu1  ;;  %3425 = vmatprep.mubr.bf16.mxu0 %v1929_v29 }
 0x5fc   :  { %v1868_v35 = vadd.f32 %v3384_v34, %v4234_v8  ;;  %v1859_v36 = vpop.f32.mrb[91].mxu1  ;;  %3426 = vmatmul.mubr.bf16.gmra.mrb[116].mxu0 %v1930_v28  ;;  %v1913_v38 = vmax.f32 %v1865_v30, 0.0 }
 0x5fd   :  { %v1860_v37 = vadd.f32 %v4234_v8, %v1859_v36  ;;  %v1911_v41 = vmax.f32 %v1857_v33, 0.0 }
 0x5fe   :  { %v1914_v40 = vmax.f32 %v1868_v35, 0.0 }
 0x5ff   :  { %v1912_v42 = vmax.f32 %v1860_v37, 0.0 }
 0x600   :  { %v1932_v43 = vpack.c.bf16 %v1914_v40, %v1913_v38 }
 0x601   :  { %v1931_v44 = vpack.c.bf16 %v1912_v42, %v1911_v41  ;;  %v3387_v45 = vpop.f32.mrb[92].mxu1 }
 0x602   :  { %v1881_v46 = vadd.f32 %v3387_v45, %v4234_v8  ;;  %v1872_v47 = vpop.f32.mrb[93].mxu1 }
 0x603   :  { %v1873_v48 = vadd.f32 %v4234_v8, %v1872_v47  ;;  %v3388_v49 = vpop.f32.mrb[94].mxu1  ;;  %3429 = vmatprep.mubr.bf16.mxu0 %v1931_v44 }
 0x604   :  { %v1884_v50 = vadd.f32 %v3388_v49, %v4234_v8  ;;  %v1875_v51 = vpop.f32.mrb[95].mxu1  ;;  %3430 = vmatmul.mubr.bf16.gmra.mrb[120].mxu0 %v1932_v43  ;;  %v1917_v53 = vmax.f32 %v1881_v46, 0.0 }
 0x605   :  { %v1876_v52 = vadd.f32 %v4234_v8, %v1875_v51  ;;  %v1915_v55 = vmax.f32 %v1873_v48, 0.0 }
 0x606   :  { %v1918_v54 = vmax.f32 %v1884_v50, 0.0 }
 0x607   :  { %v1916_v56 = vmax.f32 %v1876_v52, 0.0 }
 0x608   :  { %v1934_v57 = vpack.c.bf16 %v1918_v54, %v1917_v53 }
 0x609   :  { %v1933_v58 = vpack.c.bf16 %v1916_v56, %v1915_v55 }
 0x60b   :  { %3433 = vmatprep.mubr.bf16.mxu0 %v1933_v58 }
 0x60c   :  { %3434 = vmatmul.mubr.bf16.gmra.mrb[124].mxu0 %v1934_v57 }
 0x6a7   :  { %v3407_v61 = vpop.f32.mrb[96].mxu0 }
 0x6a8   :  { %v2051_v62 = vadd.f32 %v3407_v61, %v4268_v60  ;;  %v2042_v63 = vpop.f32.mrb[97].mxu0 }
 0x6a9   :  { %v2043_v0 = vadd.f32 %v4268_v60, %v2042_v63  ;;  %v3408_v8 = vpop.f32.mrb[98].mxu0 }
 0x6aa   :  { %v2054_v1 = vadd.f32 %v3408_v8, %v4268_v60  ;;  %v2045_v2 = vpop.f32.mrb[99].mxu0  ;;  %v2171_v4 = vmax.f32 %v2051_v62, 0.0 }
 0x6ab   :  { %v2046_v3 = vadd.f32 %v4268_v60, %v2045_v2  ;;  %v2169_v5 = vmax.f32 %v2043_v0, 0.0 }
 0x6ac   :  { %v2172_v14 = vmax.f32 %v2054_v1, 0.0 }
 0x6ad   :  { %v2170_v6 = vmax.f32 %v2046_v3, 0.0 }
 0x6ae   :  { %v2202_v7 = vpack.c.bf16 %v2172_v14, %v2171_v4 }
 0x6af   :  { %v2201_v9 = vpack.c.bf16 %v2170_v6, %v2169_v5  ;;  %v3411_v10 = vpop.f32.mrb[100].mxu0 }
 0x6b0   :  { %v2067_v20 = vadd.f32 %v3411_v10, %v4268_v60  ;;  %v2058_v11 = vpop.f32.mrb[101].mxu0 }
 0x6b1   :  { %v2059_v12 = vadd.f32 %v4268_v60, %v2058_v11  ;;  %v3412_v13 = vpop.f32.mrb[102].mxu0  ;;  %3453 = vmatprep.mubr.bf16.mxu1 %v2201_v9 }
 0x6b2   :  { %v2070_v15 = vadd.f32 %v3412_v13, %v4268_v60  ;;  %v2061_v16 = vpop.f32.mrb[103].mxu0  ;;  %3454 = vmatmul.mubr.bf16.vlgmr.msra.gmra.mrb[96].mxu1 %v2202_v7  ;;  %v2175_v17 = vmax.f32 %v2067_v20, 0.0 }
 0x6b3   :  { %v2062_v26 = vadd.f32 %v4268_v60, %v2061_v16  ;;  %v2173_v19 = vmax.f32 %v2059_v12, 0.0 }
 0x6b4   :  { %v2176_v18 = vmax.f32 %v2070_v15, 0.0 }
 0x6b5   :  { %v2174_v21 = vmax.f32 %v2062_v26, 0.0 }
 0x6b6   :  { %v2204_v22 = vpack.c.bf16 %v2176_v18, %v2175_v17 }
 0x6b7   :  { %v2203_v32 = vpack.c.bf16 %v2174_v21, %v2173_v19  ;;  %v3415_v23 = vpop.f32.mrb[104].mxu0 }
 0x6b8   :  { %v2083_v24 = vadd.f32 %v3415_v23, %v4268_v60  ;;  %v2074_v25 = vpop.f32.mrb[105].mxu0 }
 0x6b9   :  { %v2075_v27 = vadd.f32 %v4268_v60, %v2074_v25  ;;  %v3416_v28 = vpop.f32.mrb[106].mxu0  ;;  %3457 = vmatprep.mubr.bf16.mxu1 %v2203_v32 }
 0x6ba   :  { %v2086_v29 = vadd.f32 %v3416_v28, %v4268_v60  ;;  %v2077_v39 = vpop.f32.mrb[107].mxu0  ;;  %3458 = vmatmul.mubr.bf16.gmra.mrb[100].mxu1 %v2204_v22  ;;  %v2179_v31 = vmax.f32 %v2083_v24, 0.0 }
 0x6bb   :  { %v2078_v30 = vadd.f32 %v4268_v60, %v2077_v39  ;;  %v2177_v34 = vmax.f32 %v2075_v27, 0.0 }
 0x6bc   :  { %v2180_v33 = vmax.f32 %v2086_v29, 0.0 }
 0x6bd   :  { %v2178_v35 = vmax.f32 %v2078_v30, 0.0 }
 0x6be   :  { %v2206_v36 = vpack.c.bf16 %v2180_v33, %v2179_v31 }
 0x6bf   :  { %v2205_v37 = vpack.c.bf16 %v2178_v35, %v2177_v34  ;;  %v3419_v38 = vpop.f32.mrb[108].mxu0 }
 0x6c0   :  { %v2099_v40 = vadd.f32 %v3419_v38, %v4268_v60  ;;  %v2090_v41 = vpop.f32.mrb[109].mxu0 }
 0x6c1   :  { %v2091_v42 = vadd.f32 %v4268_v60, %v2090_v41  ;;  %v3420_v43 = vpop.f32.mrb[110].mxu0  ;;  %3461 = vmatprep.mubr.bf16.mxu1 %v2205_v37 }
 0x6c2   :  { %v2102_v44 = vadd.f32 %v3420_v43, %v4268_v60  ;;  %v2093_v45 = vpop.f32.mrb[111].mxu0  ;;  %3462 = vmatmul.mubr.bf16.gmra.mrb[104].mxu1 %v2206_v36  ;;  %v2183_v47 = vmax.f32 %v2099_v40, 0.0 }
 0x6c3   :  { %v2094_v46 = vadd.f32 %v4268_v60, %v2093_v45  ;;  %v2181_v49 = vmax.f32 %v2091_v42, 0.0 }
 0x6c4   :  { %v2184_v48 = vmax.f32 %v2102_v44, 0.0 }
 0x6c5   :  { %v2182_v50 = vmax.f32 %v2094_v46, 0.0  ;;  %v4302_v46 = vld [vmem:[#allocation13] ss:$0 sm:$0xff] }
 0x6c6   :  { %v2208_v51 = vpack.c.bf16 %v2184_v48, %v2183_v47 }
 0x6c7   :  { %v2207_v52 = vpack.c.bf16 %v2182_v50, %v2181_v49  ;;  %v3423_v53 = vpop.f32.mrb[112].mxu0 }
 0x6c8   :  { %v2115_v54 = vadd.f32 %v3423_v53, %v4268_v60  ;;  %v2106_v55 = vpop.f32.mrb[113].mxu0 }
 0x6c9   :  { %v2107_v56 = vadd.f32 %v4268_v60, %v2106_v55  ;;  %v3424_v57 = vpop.f32.mrb[114].mxu0  ;;  %3465 = vmatprep.mubr.bf16.mxu1 %v2207_v52 }
 0x6ca   :  { %v2118_v58 = vadd.f32 %v3424_v57, %v4268_v60  ;;  %v2109_v59 = vpop.f32.mrb[115].mxu0  ;;  %3466 = vmatmul.mubr.bf16.gmra.mrb[108].mxu1 %v2208_v51  ;;  %v2187_v62 = vmax.f32 %v2115_v54, 0.0 }
 0x6cb   :  { %v2110_v61 = vadd.f32 %v4268_v60, %v2109_v59  ;;  %v2185_v0 = vmax.f32 %v2107_v56, 0.0 }
 0x6cc   :  { %v2188_v63 = vmax.f32 %v2118_v58, 0.0 }
 0x6cd   :  { %v2186_v8 = vmax.f32 %v2110_v61, 0.0 }
 0x6ce   :  { %v2210_v1 = vpack.c.bf16 %v2188_v63, %v2187_v62 }
 0x6cf   :  { %v2209_v2 = vpack.c.bf16 %v2186_v8, %v2185_v0  ;;  %v3427_v3 = vpop.f32.mrb[116].mxu0 }
 0x6d0   :  { %v2131_v4 = vadd.f32 %v3427_v3, %v4268_v60  ;;  %v2122_v14 = vpop.f32.mrb[117].mxu0 }
 0x6d1   :  { %v2123_v5 = vadd.f32 %v4268_v60, %v2122_v14  ;;  %v3428_v6 = vpop.f32.mrb[118].mxu0  ;;  %3469 = vmatprep.mubr.bf16.mxu1 %v2209_v2 }
 0x6d2   :  { %v2134_v7 = vadd.f32 %v3428_v6, %v4268_v60  ;;  %v2125_v9 = vpop.f32.mrb[119].mxu0  ;;  %3470 = vmatmul.mubr.bf16.gmra.mrb[112].mxu1 %v2210_v1  ;;  %v2191_v20 = vmax.f32 %v2131_v4, 0.0 }
 0x6d3   :  { %v2126_v10 = vadd.f32 %v4268_v60, %v2125_v9  ;;  %v2189_v12 = vmax.f32 %v2123_v5, 0.0 }
 0x6d4   :  { %v2192_v11 = vmax.f32 %v2134_v7, 0.0 }
 0x6d5   :  { %v2190_v13 = vmax.f32 %v2126_v10, 0.0 }
 0x6d6   :  { %v2212_v15 = vpack.c.bf16 %v2192_v11, %v2191_v20 }
 0x6d7   :  { %v2211_v16 = vpack.c.bf16 %v2190_v13, %v2189_v12  ;;  %v3431_v26 = vpop.f32.mrb[120].mxu0 }
 0x6d8   :  { %v2147_v17 = vadd.f32 %v3431_v26, %v4268_v60  ;;  %v2138_v18 = vpop.f32.mrb[121].mxu0 }
 0x6d9   :  { %v2139_v19 = vadd.f32 %v4268_v60, %v2138_v18  ;;  %v3432_v21 = vpop.f32.mrb[122].mxu0  ;;  %3473 = vmatprep.mubr.bf16.mxu1 %v2211_v16 }
 0x6da   :  { %v2150_v22 = vadd.f32 %v3432_v21, %v4268_v60  ;;  %v2141_v32 = vpop.f32.mrb[123].mxu0  ;;  %3474 = vmatmul.mubr.bf16.gmra.mrb[116].mxu1 %v2212_v15  ;;  %v2195_v24 = vmax.f32 %v2147_v17, 0.0 }
 0x6db   :  { %v2142_v23 = vadd.f32 %v4268_v60, %v2141_v32  ;;  %v2193_v27 = vmax.f32 %v2139_v19, 0.0 }
 0x6dc   :  { %v2196_v25 = vmax.f32 %v2150_v22, 0.0 }
 0x6dd   :  { %v2194_v28 = vmax.f32 %v2142_v23, 0.0 }
 0x6de   :  { %v2214_v29 = vpack.c.bf16 %v2196_v25, %v2195_v24 }
 0x6df   :  { %v2213_v39 = vpack.c.bf16 %v2194_v28, %v2193_v27  ;;  %v3435_v30 = vpop.f32.mrb[124].mxu0 }
 0x6e0   :  { %v2163_v31 = vadd.f32 %v3435_v30, %v4268_v60  ;;  %v2154_v33 = vpop.f32.mrb[125].mxu0 }
 0x6e1   :  { %v2155_v34 = vadd.f32 %v4268_v60, %v2154_v33  ;;  %v3436_v35 = vpop.f32.mrb[126].mxu0  ;;  %3477 = vmatprep.mubr.bf16.mxu1 %v2213_v39 }
 0x6e2   :  { %v2166_v36 = vadd.f32 %v3436_v35, %v4268_v60  ;;  %v2157_v37 = vpop.f32.mrb[127].mxu0  ;;  %3478 = vmatmul.mubr.bf16.gmra.mrb[120].mxu1 %v2214_v29  ;;  %v2199_v40 = vmax.f32 %v2163_v31, 0.0 }
 0x6e3   :  { %v2158_v38 = vadd.f32 %v4268_v60, %v2157_v37  ;;  %v2197_v42 = vmax.f32 %v2155_v34, 0.0 }
 0x6e4   :  { %v2200_v41 = vmax.f32 %v2166_v36, 0.0 }
 0x6e5   :  { %v2198_v43 = vmax.f32 %v2158_v38, 0.0 }
 0x6e6   :  { %v2216_v44 = vpack.c.bf16 %v2200_v41, %v2199_v40 }
 0x6e7   :  { %v2215_v45 = vpack.c.bf16 %v2198_v43, %v2197_v42 }
 0x6e9   :  { %3481 = vmatprep.mubr.bf16.mxu1 %v2215_v45 }
 0x6ea   :  { %3482 = vmatmul.mubr.bf16.gmra.mrb[124].mxu1 %v2216_v44 }
 0x785   :  { %v3455_v47 = vpop.f32.mrb[96].mxu1 }
 0x786   :  { %v4305_v48 = vadd.f32 %v3455_v47, %v4302_v46  ;;  %v2322_v49 = vpop.f32.mrb[97].mxu1 }
 0x787   :  { %v4308_v50 = vadd.f32 %v4302_v46, %v2322_v49  ;;  %v3456_v51 = vpop.f32.mrb[98].mxu1 }
 0x788   :  { %2453 = vmax.xlane.f32.xlu1 %v4305_v48  ;;  %v2325_v60 = vpop.f32.mrb[99].mxu1  ;;  %v4313_v52 = vadd.f32 %v3456_v51, %v4302_v46 }
 0x789   :  { %2449 = vmax.xlane.f32.xlu0 %v4308_v50  ;;  %v4316_v53 = vadd.f32 %v4302_v46, %v2325_v60 }
 0x78c   :  { %2455 = vmax.xlane.f32.xlu1 %v4313_v52 }
 0x78d   :  { %v3459_v54 = vpop.f32.mrb[100].mxu1  ;;  %2451 = vmax.xlane.f32.xlu0 %v4316_v53 }
 0x78e   :  { %v4321_v55 = vadd.f32 %v3459_v54, %v4302_v46  ;;  %v2338_v56 = vpop.f32.mrb[101].mxu1 }
 0x78f   :  { %v3460_v57 = vpop.f32.mrb[102].mxu1  ;;  %v4329_v61 = vadd.f32 %v4302_v46, %v2338_v56 }
 0x790   :  { %v4324_v58 = vadd.f32 %v3460_v57, %v4302_v46  ;;  %v2341_v59 = vpop.f32.mrb[103].mxu1 }
 0x791   :  { %2461 = vmax.xlane.f32.xlu0 %v4321_v55  ;;  %v4332_v62 = vadd.f32 %v4302_v46, %v2341_v59 }
 0x792   :  { %2463 = vmax.xlane.f32.xlu1 %v4324_v58 }
 0x795   :  { %v3463_v63 = vpop.f32.mrb[104].mxu1  ;;  %2457 = vmax.xlane.f32.xlu0 %v4329_v61 }
 0x796   :  { %v4336_v0 = vadd.f32 %v3463_v63, %v4302_v46  ;;  %v2354_v8 = vpop.f32.mrb[105].mxu1  ;;  %2459 = vmax.xlane.f32.xlu1 %v4332_v62 }
 0x797   :  { %v3464_v1 = vpop.f32.mrb[106].mxu1  ;;  %v4345_v4 = vadd.f32 %v4302_v46, %v2354_v8 }
 0x798   :  { %v4340_v2 = vadd.f32 %v3464_v1, %v4302_v46  ;;  %v2357_v3 = vpop.f32.mrb[107].mxu1 }
 0x799   :  { %2469 = vmax.xlane.f32.xlu0 %v4336_v0  ;;  %v4348_v14 = vadd.f32 %v4302_v46, %v2357_v3 }
 0x79a   :  { %2471 = vmax.xlane.f32.xlu1 %v4340_v2 }
 0x79d   :  { %v3467_v5 = vpop.f32.mrb[108].mxu1  ;;  %2465 = vmax.xlane.f32.xlu0 %v4345_v4 }
 0x79e   :  { %v4352_v6 = vadd.f32 %v3467_v5, %v4302_v46  ;;  %v2370_v7 = vpop.f32.mrb[109].mxu1  ;;  %2467 = vmax.xlane.f32.xlu1 %v4348_v14 }
 0x79f   :  { %v3468_v9 = vpop.f32.mrb[110].mxu1  ;;  %v4361_v11 = vadd.f32 %v4302_v46, %v2370_v7 }
 0x7a0   :  { %v4356_v10 = vadd.f32 %v3468_v9, %v4302_v46  ;;  %v2373_v20 = vpop.f32.mrb[111].mxu1 }
 0x7a1   :  { %2477 = vmax.xlane.f32.xlu0 %v4352_v6  ;;  %v4364_v12 = vadd.f32 %v4302_v46, %v2373_v20 }
 0x7a2   :  { %2479 = vmax.xlane.f32.xlu1 %v4356_v10 }
 0x7a5   :  { %v3471_v13 = vpop.f32.mrb[112].mxu1  ;;  %2473 = vmax.xlane.f32.xlu0 %v4361_v11 }
 0x7a6   :  { %v4368_v15 = vadd.f32 %v3471_v13, %v4302_v46  ;;  %v2386_v16 = vpop.f32.mrb[113].mxu1  ;;  %2475 = vmax.xlane.f32.xlu1 %v4364_v12 }
 0x7a7   :  { %v3472_v26 = vpop.f32.mrb[114].mxu1  ;;  %v4377_v19 = vadd.f32 %v4302_v46, %v2386_v16 }
 0x7a8   :  { %v4372_v17 = vadd.f32 %v3472_v26, %v4302_v46  ;;  %v2389_v18 = vpop.f32.mrb[115].mxu1 }
 0x7a9   :  { %2485 = vmax.xlane.f32.xlu0 %v4368_v15  ;;  %v4380_v21 = vadd.f32 %v4302_v46, %v2389_v18 }
 0x7aa   :  { %2487 = vmax.xlane.f32.xlu1 %v4372_v17 }
 0x7ad   :  { %v3475_v22 = vpop.f32.mrb[116].mxu1  ;;  %2481 = vmax.xlane.f32.xlu0 %v4377_v19 }
 0x7ae   :  { %v4384_v32 = vadd.f32 %v3475_v22, %v4302_v46  ;;  %v2402_v23 = vpop.f32.mrb[117].mxu1  ;;  %2483 = vmax.xlane.f32.xlu1 %v4380_v21 }
 0x7af   :  { %v3476_v24 = vpop.f32.mrb[118].mxu1  ;;  %v4393_v28 = vadd.f32 %v4302_v46, %v2402_v23 }
 0x7b0   :  { %v4388_v25 = vadd.f32 %v3476_v24, %v4302_v46  ;;  %v2405_v27 = vpop.f32.mrb[119].mxu1 }
 0x7b1   :  { %2493 = vmax.xlane.f32.xlu0 %v4384_v32  ;;  %v4396_v29 = vadd.f32 %v4302_v46, %v2405_v27 }
 0x7b2   :  { %2495 = vmax.xlane.f32.xlu1 %v4388_v25 }
 0x7b5   :  { %v3479_v39 = vpop.f32.mrb[120].mxu1  ;;  %2489 = vmax.xlane.f32.xlu0 %v4393_v28 }
 0x7b6   :  { %v4400_v30 = vadd.f32 %v3479_v39, %v4302_v46  ;;  %v2418_v31 = vpop.f32.mrb[121].mxu1  ;;  %2491 = vmax.xlane.f32.xlu1 %v4396_v29 }
 0x7b7   :  { %v3480_v33 = vpop.f32.mrb[122].mxu1  ;;  %v4409_v36 = vadd.f32 %v4302_v46, %v2418_v31 }
 0x7b8   :  { %v4404_v34 = vadd.f32 %v3480_v33, %v4302_v46  ;;  %v2421_v35 = vpop.f32.mrb[123].mxu1 }
 0x7b9   :  { %2501 = vmax.xlane.f32.xlu0 %v4400_v30  ;;  %v4412_v37 = vadd.f32 %v4302_v46, %v2421_v35 }
 0x7ba   :  { %2503 = vmax.xlane.f32.xlu1 %v4404_v34 }
 0x7bd   :  { %v3483_v38 = vpop.f32.mrb[124].mxu1  ;;  %2497 = vmax.xlane.f32.xlu0 %v4409_v36 }
 0x7be   :  { %v2434_v40 = vpop.f32.mrb[125].mxu1  ;;  %2499 = vmax.xlane.f32.xlu1 %v4412_v37  ;;  %v4424_v45 = vadd.f32 %v3483_v38, %v4302_v46 }
 0x7bf   :  { %v4417_v41 = vadd.f32 %v4302_v46, %v2434_v40  ;;  %v3484_v42 = vpop.f32.mrb[126].mxu1 }
 0x7c0   :  { %v2437_v43 = vpop.f32.mrb[127].mxu1  ;;  %v4428_v47 = vadd.f32 %v3484_v42, %v4302_v46 }
 0x7c1   :  { %v4420_v44 = vadd.f32 %v4302_v46, %v2437_v43  ;;  %2505 = vmax.xlane.f32.xlu0 %v4417_v41 }
 0x7c3   :  { %2507 = vmax.xlane.f32.xlu1 %v4420_v44 }
 0x7c5   :  { %2509 = vmax.xlane.f32.xlu0 %v4424_v45 }
 0x7c7   :  { %2511 = vmax.xlane.f32.xlu1 %v4428_v47 }
 0x815   :  { %v2454_v49 = vpop.xlane.xlu1 %2453 }
 0x816   :  { %v4433_v51 = vsub.f32 %v4305_v48, %v2454_v49  ;;  %v2450_v60 = vpop.xlane.xlu0 %2449 }
 0x817   :  { %v4436_v54 = vsub.f32 %v4308_v50, %v2450_v60 }
 0x818   :  { %v2549_v56 = vmul.f32 1.442695, %v4433_v51 }
 0x819   :  { %v2545_v57 = vmul.f32 1.442695, %v4436_v54  ;;  %v2456_v59 = vpop.xlane.xlu1 %2455 }
 0x81a   :  { %3579 = vpow2.f32 %v2549_v56  ;;  %v4441_v46 = vsub.f32 %v4313_v52, %v2456_v59  ;;  %v2452_v63 = vpop.xlane.xlu0 %2451 }
 0x81b   :  { %v4444_v8 = vsub.f32 %v4316_v53, %v2452_v63  ;;  %3581 = vpow2.f32 %v2545_v57 }
 0x81c   :  { %v2551_v48 = vmul.f32 1.442695, %v4441_v46 }
 0x81d   :  { %v2547_v50 = vmul.f32 1.442695, %v4444_v8 }
 0x81e   :  { %3583 = vpow2.f32 %v2551_v48  ;;  %v2462_v1 = vpop.xlane.xlu0 %2461 }
 0x81f   :  { %v4449_v3 = vsub.f32 %v4321_v55, %v2462_v1  ;;  %v2464_v5 = vpop.xlane.xlu1 %2463  ;;  %3585 = vpow2.f32 %v2547_v50 }
 0x820   :  { %v4452_v7 = vsub.f32 %v4324_v58, %v2464_v5 }
 0x821   :  { %v2557_v52 = vmul.f32 1.442695, %v4449_v3 }
 0x822   :  { %v2559_v53 = vmul.f32 1.442695, %v4452_v7  ;;  %v2458_v9 = vpop.xlane.xlu0 %2457 }
 0x823   :  { %3587 = vpow2.f32 %v2557_v52  ;;  %v4457_v20 = vsub.f32 %v4329_v61, %v2458_v9  ;;  %v2460_v13 = vpop.xlane.xlu1 %2459 }
 0x824   :  { %v3580_v16 = vpop.eup %3579  ;;  %v4460_v26 = vsub.f32 %v4332_v62, %v2460_v13  ;;  %3589 = vpow2.f32 %v2559_v53 }
 0x825   :  { %v2553_v55 = vmul.f32 1.442695, %v4457_v20  ;;  %2613 = vadd.xlane.f32.xlu0 %v3580_v16  ;;  %v3582_v22 = vpop.eup %3581 }
 0x826   :  { %v2555_v58 = vmul.f32 1.442695, %v4460_v26  ;;  %v2470_v18 = vpop.xlane.xlu0 %2469 }
 0x827   :  { %3591 = vpow2.f32 %v2553_v55  ;;  %v4465_v23 = vsub.f32 %v4336_v0, %v2470_v18  ;;  %v2472_v24 = vpop.xlane.xlu1 %2471 }
 0x828   :  { %v3584_v61 = vpop.eup %3583  ;;  %v4468_v27 = vsub.f32 %v4340_v2, %v2472_v24  ;;  %3593 = vpow2.f32 %v2555_v58 }
 0x829   :  { %v2565_v62 = vmul.f32 1.442695, %v4465_v23  ;;  %2615 = vadd.xlane.f32.xlu1 %v3584_v61  ;;  %2609 = vadd.xlane.f32.xlu0 %v3582_v22  ;;  %v3586_v0 = vpop.eup %3585 }
 0x82a   :  { %v2567_v39 = vmul.f32 1.442695, %v4468_v27  ;;  %v2466_v31 = vpop.xlane.xlu0 %2465 }
 0x82b   :  { %3595 = vpow2.f32 %v2565_v62  ;;  %v4473_v33 = vsub.f32 %v4345_v4, %v2466_v31  ;;  %v2468_v35 = vpop.xlane.xlu1 %2467 }
 0x82c   :  { %v4476_v38 = vsub.f32 %v4348_v14, %v2468_v35  ;;  %3597 = vpow2.f32 %v2567_v39 }
 0x82d   :  { %v3588_v40 = vpop.eup %3587  ;;  %v2561_v2 = vmul.f32 1.442695, %v4473_v33  ;;  %2611 = vadd.xlane.f32.xlu1 %v3586_v0 }
 0x82e   :  { %v2563_v42 = vmul.f32 1.442695, %v4476_v38  ;;  %2621 = vadd.xlane.f32.xlu0 %v3588_v40  ;;  %v2478_v43 = vpop.xlane.xlu0 %2477  ;;  %v3590_v60 = vpop.eup %3589 }
 0x82f   :  { %3599 = vpow2.f32 %v2561_v2  ;;  %v4481_v49 = vsub.f32 %v4352_v6, %v2478_v43  ;;  %v2480_v4 = vpop.xlane.xlu1 %2479 }
 0x830   :  { %v4484_v56 = vsub.f32 %v4356_v10, %v2480_v4  ;;  %3601 = vpow2.f32 %v2563_v42 }
 0x831   :  { %v3592_v14 = vpop.eup %3591  ;;  %v2573_v57 = vmul.f32 1.442695, %v4481_v49  ;;  %2623 = vadd.xlane.f32.xlu1 %v3590_v60 }
 0x832   :  { %v2575_v59 = vmul.f32 1.442695, %v4484_v56  ;;  %2617 = vadd.xlane.f32.xlu0 %v3592_v14  ;;  %v2474_v63 = vpop.xlane.xlu0 %2473  ;;  %v3594_v50 = vpop.eup %3593 }
 0x833   :  { %3603 = vpow2.f32 %v2573_v57  ;;  %v4489_v48 = vsub.f32 %v4361_v11, %v2474_v63  ;;  %v2476_v6 = vpop.xlane.xlu1 %2475 }
 0x834   :  { %v4492_v1 = vsub.f32 %v4364_v12, %v2476_v6  ;;  %3605 = vpow2.f32 %v2575_v59 }
 0x835   :  { %v3596_v10 = vpop.eup %3595  ;;  %v2569_v5 = vmul.f32 1.442695, %v4489_v48  ;;  %2619 = vadd.xlane.f32.xlu1 %v3594_v50 }
 0x836   :  { %v2571_v52 = vmul.f32 1.442695, %v4492_v1  ;;  %2629 = vadd.xlane.f32.xlu0 %v3596_v10  ;;  %v2486_v53 = vpop.xlane.xlu0 %2485  ;;  %v3598_v13 = vpop.eup %3597 }
 0x837   :  { %3607 = vpow2.f32 %v2569_v5  ;;  %v4497_v9 = vsub.f32 %v4368_v15, %v2486_v53  ;;  %v2488_v11 = vpop.xlane.xlu1 %2487 }
 0x838   :  { %v4500_v16 = vsub.f32 %v4372_v17, %v2488_v11  ;;  %3609 = vpow2.f32 %v2571_v52 }
 0x839   :  { %v3600_v12 = vpop.eup %3599  ;;  %v2581_v55 = vmul.f32 1.442695, %v4497_v9  ;;  %2631 = vadd.xlane.f32.xlu1 %v3598_v13 }
 0x83a   :  { %v2583_v58 = vmul.f32 1.442695, %v4500_v16  ;;  %2625 = vadd.xlane.f32.xlu0 %v3600_v12  ;;  %v2482_v18 = vpop.xlane.xlu0 %2481  ;;  %v3602_v24 = vpop.eup %3601 }
 0x83b   :  { %3611 = vpow2.f32 %v2581_v55  ;;  %v4505_v22 = vsub.f32 %v4377_v19, %v2482_v18  ;;  %v2484_v15 = vpop.xlane.xlu1 %2483 }
 0x83c   :  { %v4508_v61 = vsub.f32 %v4380_v21, %v2484_v15  ;;  %3613 = vpow2.f32 %v2583_v58 }
 0x83d   :  { %v3604_v17 = vpop.eup %3603  ;;  %v2577_v62 = vmul.f32 1.442695, %v4505_v22  ;;  %2627 = vadd.xlane.f32.xlu1 %v3602_v24 }
 0x83e   :  { %v2579_v39 = vmul.f32 1.442695, %v4508_v61  ;;  %2637 = vadd.xlane.f32.xlu0 %v3604_v17  ;;  %v2494_v31 = vpop.xlane.xlu0 %2493  ;;  %v3606_v0 = vpop.eup %3605 }
 0x83f   :  { %3615 = vpow2.f32 %v2577_v62  ;;  %v4513_v35 = vsub.f32 %v4384_v32, %v2494_v31  ;;  %v2496_v19 = vpop.xlane.xlu1 %2495 }
 0x840   :  { %v4516_v40 = vsub.f32 %v4388_v25, %v2496_v19  ;;  %3617 = vpow2.f32 %v2579_v39 }
 0x841   :  { %v3608_v21 = vpop.eup %3607  ;;  %v2589_v2 = vmul.f32 1.442695, %v4513_v35  ;;  %2639 = vadd.xlane.f32.xlu1 %v3606_v0 }
 0x842   :  { %v2591_v42 = vmul.f32 1.442695, %v4516_v40  ;;  %2633 = vadd.xlane.f32.xlu0 %v3608_v21  ;;  %v2490_v43 = vpop.xlane.xlu0 %2489  ;;  %v3610_v60 = vpop.eup %3609 }
 0x843   :  { %3619 = vpow2.f32 %v2589_v2  ;;  %v4521_v4 = vsub.f32 %v4393_v28, %v2490_v43  ;;  %v2492_v32 = vpop.xlane.xlu1 %2491 }
 0x844   :  { %v4524_v14 = vsub.f32 %v4396_v29, %v2492_v32  ;;  %3621 = vpow2.f32 %v2591_v42 }
 0x845   :  { %v3612_v25 = vpop.eup %3611  ;;  %v2585_v57 = vmul.f32 1.442695, %v4521_v4  ;;  %2635 = vadd.xlane.f32.xlu1 %v3610_v60 }
 0x846   :  { %v2587_v59 = vmul.f32 1.442695, %v4524_v14  ;;  %2645 = vadd.xlane.f32.xlu0 %v3612_v25  ;;  %v2502_v63 = vpop.xlane.xlu0 %2501  ;;  %v3614_v50 = vpop.eup %3613 }
 0x847   :  { %3623 = vpow2.f32 %v2585_v57  ;;  %v4529_v6 = vsub.f32 %v4400_v30, %v2502_v63  ;;  %v2504_v28 = vpop.xlane.xlu1 %2503 }
 0x848   :  { %v4532_v10 = vsub.f32 %v4404_v34, %v2504_v28  ;;  %3625 = vpow2.f32 %v2587_v59 }
 0x849   :  { %v3616_v29 = vpop.eup %3615  ;;  %v2597_v5 = vmul.f32 1.442695, %v4529_v6  ;;  %2647 = vadd.xlane.f32.xlu1 %v3614_v50 }
 0x84a   :  { %v2599_v52 = vmul.f32 1.442695, %v4532_v10  ;;  %2641 = vadd.xlane.f32.xlu0 %v3616_v29  ;;  %v2498_v53 = vpop.xlane.xlu0 %2497  ;;  %v3618_v13 = vpop.eup %3617 }
 0x84b   :  { %3627 = vpow2.f32 %v2597_v5  ;;  %v4537_v11 = vsub.f32 %v4409_v36, %v2498_v53  ;;  %v2500_v30 = vpop.xlane.xlu1 %2499 }
 0x84c   :  { %v4540_v12 = vsub.f32 %v4412_v37, %v2500_v30  ;;  %3629 = vpow2.f32 %v2599_v52 }
 0x84d   :  { %v3620_v34 = vpop.eup %3619  ;;  %v2593_v55 = vmul.f32 1.442695, %v4537_v11  ;;  %2643 = vadd.xlane.f32.xlu1 %v3618_v13 }
 0x84e   :  { %v2595_v58 = vmul.f32 1.442695, %v4540_v12  ;;  %2653 = vadd.xlane.f32.xlu0 %v3620_v34  ;;  %v2506_v18 = vpop.xlane.xlu0 %2505  ;;  %v3622_v36 = vpop.eup %3621 }
 0x84f   :  { %3631 = vpow2.f32 %v2593_v55  ;;  %v4545_v15 = vsub.f32 %v4417_v41, %v2506_v18 }
 0x850   :  { %v2508_v24 = vpop.xlane.xlu1 %2507  ;;  %3633 = vpow2.f32 %v2595_v58 }
 0x851   :  { %v3624_v17 = vpop.eup %3623  ;;  %v2601_v62 = vmul.f32 1.442695, %v4545_v15  ;;  %v4549_v37 = vsub.f32 %v4420_v44, %v2508_v24  ;;  %2655 = vadd.xlane.f32.xlu1 %v3622_v36 }
 0x852   :  { %2649 = vadd.xlane.f32.xlu0 %v3624_v17  ;;  %v2510_v39 = vpop.xlane.xlu0 %2509  ;;  %v3626_v41 = vpop.eup %3625 }
 0x853   :  { %3635 = vpow2.f32 %v2601_v62  ;;  %v2603_v31 = vmul.f32 1.442695, %v4549_v37  ;;  %v4553_v19 = vsub.f32 %v4424_v45, %v2510_v39 }
 0x854   :  { %v2512_v0 = vpop.xlane.xlu1 %2511 }
 0x855   :  { %v3628_v21 = vpop.eup %3627  ;;  %3637 = vpow2.f32 %v2603_v31  ;;  %v2605_v2 = vmul.f32 1.442695, %v4553_v19  ;;  %v4557_v42 = vsub.f32 %v4428_v47, %v2512_v0  ;;  %2651 = vadd.xlane.f32.xlu1 %v3626_v41 }
 0x856   :  { %2661 = vadd.xlane.f32.xlu0 %v3628_v21  ;;  %v3630_v43 = vpop.eup %3629 }
 0x857   :  { %3639 = vpow2.f32 %v2605_v2  ;;  %v2607_v44 = vmul.f32 1.442695, %v4557_v42 }
 0x859   :  { %v3632_v32 = vpop.eup %3631  ;;  %3641 = vpow2.f32 %v2607_v44  ;;  %2663 = vadd.xlane.f32.xlu1 %v3630_v43 }
 0x85a   :  { %2657 = vadd.xlane.f32.xlu0 %v3632_v32  ;;  %v3634_v45 = vpop.eup %3633 }
 0x85d   :  { %v3636_v60 = vpop.eup %3635  ;;  %2659 = vadd.xlane.f32.xlu1 %v3634_v45 }
 0x85e   :  { %2665 = vadd.xlane.f32.xlu0 %v3636_v60 }
 0x85f   :  { %v3638_v25 = vpop.eup %3637 }
 0x861   :  { %v3640_v57 = vpop.eup %3639  ;;  %2667 = vadd.xlane.f32.xlu1 %v3638_v25 }
 0x862   :  { %2669 = vadd.xlane.f32.xlu0 %v3640_v57 }
 0x863   :  { %v3642_v47 = vpop.eup %3641 }
 0x865   :  { %2671 = vadd.xlane.f32.xlu1 %v3642_v47 }
 0x8b2   :  { %v2614_v59 = vpop.xlane.xlu0 %2613 }
 0x8b3   :  { %3643 = vlog2.f32 %v2614_v59 }
 0x8b6   :  { %v2616_v63 = vpop.xlane.xlu1 %2615  ;;  %v2610_v28 = vpop.xlane.xlu0 %2609 }
 0x8b7   :  { %3645 = vlog2.f32 %v2616_v63 }
 0x8b8   :  { %3647 = vlog2.f32 %v2610_v28 }
 0x8ba   :  { %v2612_v50 = vpop.xlane.xlu1 %2611 }
 0x8bb   :  { %3649 = vlog2.f32 %v2612_v50  ;;  %v2622_v29 = vpop.xlane.xlu0 %2621 }
 0x8bc   :  { %3651 = vlog2.f32 %v2622_v29 }
 0x8bd   :  { %v3644_v5 = vpop.eup %3643 }
 0x8be   :  { %v2678_v52 = vmul.f32 0.6931472, %v3644_v5  ;;  %v2624_v53 = vpop.xlane.xlu1 %2623 }
 0x8bf   :  { %3653 = vlog2.f32 %v2624_v53  ;;  %v2618_v30 = vpop.xlane.xlu0 %2617 }
 0x8c0   :  { %v2739_v13 = vsub.f32 %v4433_v51, %v2678_v52  ;;  %3655 = vlog2.f32 %v2618_v30 }
 0x8c1   :  { %v3646_v34 = vpop.eup %3645 }
 0x8c2   :  { %v3648_v55 = vpop.eup %3647  ;;  %2771 = vst [vmem:[#allocation14 + $0x10] sm:$0xff] %v2739_v13  ;;  %v2680_v58 = vmul.f32 0.6931472, %v3646_v34  ;;  %v2620_v18 = vpop.xlane.xlu1 %2619 }
 0x8c3   :  { %v2674_v36 = vmul.f32 0.6931472, %v3648_v55  ;;  %3657 = vlog2.f32 %v2620_v18  ;;  %v2630_v24 = vpop.xlane.xlu0 %2629 }
 0x8c4   :  { %v2740_v17 = vsub.f32 %v4441_v46, %v2680_v58  ;;  %3659 = vlog2.f32 %v2630_v24 }
 0x8c5   :  { %v3650_v62 = vpop.eup %3649  ;;  %v2737_v39 = vsub.f32 %v4436_v54, %v2674_v36 }
 0x8c6   :  { %v3652_v31 = vpop.eup %3651  ;;  %2772 = vst [vmem:[#allocation14 + $0x18] sm:$0xff] %v2740_v17  ;;  %v2676_v41 = vmul.f32 0.6931472, %v3650_v62  ;;  %v2632_v0 = vpop.xlane.xlu1 %2631 }
 0x8c7   :  { %2769 = vst [vmem:[#allocation14] sm:$0xff] %v2737_v39  ;;  %v2686_v51 = vmul.f32 0.6931472, %v3652_v31  ;;  %3661 = vlog2.f32 %v2632_v0  ;;  %v2626_v21 = vpop.xlane.xlu0 %2625 }
 0x8c8   :  { %v2738_v2 = vsub.f32 %v4444_v8, %v2676_v41  ;;  %3663 = vlog2.f32 %v2626_v21 }
 0x8c9   :  { %v3654_v44 = vpop.eup %3653  ;;  %v2743_v43 = vsub.f32 %v4449_v3, %v2686_v51 }
 0x8ca   :  { %v3656_v32 = vpop.eup %3655  ;;  %2770 = vst [vmem:[#allocation14 + $0x8] sm:$0xff] %v2738_v2  ;;  %v2688_v46 = vmul.f32 0.6931472, %v3654_v44  ;;  %v2628_v45 = vpop.xlane.xlu1 %2627 }
 0x8cb   :  { %2775 = vst [vmem:[#allocation14 + $0x30] sm:$0xff] %v2743_v43  ;;  %v2682_v54 = vmul.f32 0.6931472, %v3656_v32  ;;  %3665 = vlog2.f32 %v2628_v45  ;;  %v2638_v60 = vpop.xlane.xlu0 %2637 }
 0x8cc   :  { %v2744_v25 = vsub.f32 %v4452_v7, %v2688_v46  ;;  %3667 = vlog2.f32 %v2638_v60 }
 0x8cd   :  { %v3658_v57 = vpop.eup %3657  ;;  %v2741_v47 = vsub.f32 %v4457_v20, %v2682_v54 }
 0x8ce   :  { %v3660_v59 = vpop.eup %3659  ;;  %2776 = vst [vmem:[#allocation14 + $0x38] sm:$0xff] %v2744_v25  ;;  %v2684_v8 = vmul.f32 0.6931472, %v3658_v57  ;;  %v2640_v63 = vpop.xlane.xlu1 %2639 }
 0x8cf   :  { %2773 = vst [vmem:[#allocation14 + $0x20] sm:$0xff] %v2741_v47  ;;  %v2694_v3 = vmul.f32 0.6931472, %v3660_v59  ;;  %3669 = vlog2.f32 %v2640_v63  ;;  %v2634_v28 = vpop.xlane.xlu0 %2633 }
 0x8d0   :  { %v2742_v50 = vsub.f32 %v4460_v26, %v2684_v8  ;;  %3671 = vlog2.f32 %v2634_v28 }
 0x8d1   :  { %v3662_v29 = vpop.eup %3661  ;;  %v2747_v5 = vsub.f32 %v4465_v23, %v2694_v3 }
 0x8d2   :  { %v3664_v52 = vpop.eup %3663  ;;  %2774 = vst [vmem:[#allocation14 + $0x28] sm:$0xff] %v2742_v50  ;;  %v2696_v7 = vmul.f32 0.6931472, %v3662_v29  ;;  %v2636_v53 = vpop.xlane.xlu1 %2635 }
 0x8d3   :  { %2779 = vst [vmem:[#allocation14 + $0x50] sm:$0xff] %v2747_v5  ;;  %v2690_v20 = vmul.f32 0.6931472, %v3664_v52  ;;  %3673 = vlog2.f32 %v2636_v53  ;;  %v2646_v30 = vpop.xlane.xlu0 %2645 }
 0x8d4   :  { %v2748_v13 = vsub.f32 %v4468_v27, %v2696_v7  ;;  %3675 = vlog2.f32 %v2646_v30 }
 0x8d5   :  { %v3666_v34 = vpop.eup %3665  ;;  %v2745_v55 = vsub.f32 %v4473_v33, %v2690_v20 }
 0x8d6   :  { %v3668_v58 = vpop.eup %3667  ;;  %2780 = vst [vmem:[#allocation14 + $0x58] sm:$0xff] %v2748_v13  ;;  %v2692_v26 = vmul.f32 0.6931472, %v3666_v34  ;;  %v2648_v18 = vpop.xlane.xlu1 %2647 }
 0x8d7   :  { %2777 = vst [vmem:[#allocation14 + $0x40] sm:$0xff] %v2745_v55  ;;  %v2702_v23 = vmul.f32 0.6931472, %v3668_v58  ;;  %3677 = vlog2.f32 %v2648_v18  ;;  %v2642_v36 = vpop.xlane.xlu0 %2641 }
 0x8d8   :  { %v2746_v24 = vsub.f32 %v4476_v38, %v2692_v26  ;;  %3679 = vlog2.f32 %v2642_v36 }
 0x8d9   :  { %v3670_v17 = vpop.eup %3669  ;;  %v2751_v62 = vsub.f32 %v4481_v49, %v2702_v23 }
 0x8da   :  { %v3672_v39 = vpop.eup %3671  ;;  %2778 = vst [vmem:[#allocation14 + $0x48] sm:$0xff] %v2746_v24  ;;  %v2704_v27 = vmul.f32 0.6931472, %v3670_v17  ;;  %v2644_v31 = vpop.xlane.xlu1 %2643 }
 0x8db   :  { %2783 = vst [vmem:[#allocation14 + $0x70] sm:$0xff] %v2751_v62  ;;  %v2698_v33 = vmul.f32 0.6931472, %v3672_v39  ;;  %3681 = vlog2.f32 %v2644_v31  ;;  %v2654_v41 = vpop.xlane.xlu0 %2653 }
 0x8dc   :  { %v2752_v0 = vsub.f32 %v4484_v56, %v2704_v27  ;;  %3683 = vlog2.f32 %v2654_v41 }
 0x8dd   :  { %v3674_v51 = vpop.eup %3673  ;;  %v2749_v21 = vsub.f32 %v4489_v48, %v2698_v33 }
 0x8de   :  { %v3676_v2 = vpop.eup %3675  ;;  %2784 = vst [vmem:[#allocation14 + $0x78] sm:$0xff] %v2752_v0  ;;  %v2700_v38 = vmul.f32 0.6931472, %v3674_v51  ;;  %v2656_v44 = vpop.xlane.xlu1 %2655 }
 0x8df   :  { %2781 = vst [vmem:[#allocation14 + $0x60] sm:$0xff] %v2749_v21  ;;  %v2710_v49 = vmul.f32 0.6931472, %v3676_v2  ;;  %3685 = vlog2.f32 %v2656_v44  ;;  %v2650_v43 = vpop.xlane.xlu0 %2649 }
 0x8e0   :  { %v2750_v32 = vsub.f32 %v4492_v1, %v2700_v38  ;;  %3687 = vlog2.f32 %v2650_v43 }
 0x8e1   :  { %v3678_v46 = vpop.eup %3677  ;;  %v2755_v45 = vsub.f32 %v4497_v9, %v2710_v49 }
 0x8e2   :  { %v3680_v54 = vpop.eup %3679  ;;  %2782 = vst [vmem:[#allocation14 + $0x68] sm:$0xff] %v2750_v32  ;;  %v2712_v56 = vmul.f32 0.6931472, %v3678_v46  ;;  %v2652_v60 = vpop.xlane.xlu1 %2651 }
 0x8e3   :  { %2787 = vst [vmem:[#allocation14 + $0x90] sm:$0xff] %v2755_v45  ;;  %v2706_v48 = vmul.f32 0.6931472, %v3680_v54  ;;  %3689 = vlog2.f32 %v2652_v60  ;;  %v2662_v25 = vpop.xlane.xlu0 %2661 }
 0x8e4   :  { %v2756_v57 = vsub.f32 %v4500_v16, %v2712_v56  ;;  %3691 = vlog2.f32 %v2662_v25 }
 0x8e5   :  { %v3682_v47 = vpop.eup %3681  ;;  %v2753_v59 = vsub.f32 %v4505_v22, %v2706_v48 }
 0x8e6   :  { %v3684_v8 = vpop.eup %3683  ;;  %2788 = vst [vmem:[#allocation14 + $0x98] sm:$0xff] %v2756_v57  ;;  %v2708_v1 = vmul.f32 0.6931472, %v3682_v47  ;;  %v2664_v63 = vpop.xlane.xlu1 %2663 }
 0x8e7   :  { %2785 = vst [vmem:[#allocation14 + $0x80] sm:$0xff] %v2753_v59  ;;  %v2718_v9 = vmul.f32 0.6931472, %v3684_v8  ;;  %3693 = vlog2.f32 %v2664_v63  ;;  %v2658_v3 = vpop.xlane.xlu0 %2657 }
 0x8e8   :  { %v2754_v28 = vsub.f32 %v4508_v61, %v2708_v1  ;;  %3695 = vlog2.f32 %v2658_v3 }
 0x8e9   :  { %v3686_v50 = vpop.eup %3685  ;;  %v2759_v29 = vsub.f32 %v4513_v35, %v2718_v9 }
 0x8ea   :  { %v3688_v5 = vpop.eup %3687  ;;  %2786 = vst [vmem:[#allocation14 + $0x88] sm:$0xff] %v2754_v28  ;;  %v2720_v16 = vmul.f32 0.6931472, %v3686_v50  ;;  %v2660_v52 = vpop.xlane.xlu1 %2659 }
 0x8eb   :  { %2791 = vst [vmem:[#allocation14 + $0xb0] sm:$0xff] %v2759_v29  ;;  %v2714_v22 = vmul.f32 0.6931472, %v3688_v5  ;;  %3697 = vlog2.f32 %v2660_v52  ;;  %v2666_v7 = vpop.xlane.xlu0 %2665 }
 0x8ec   :  { %v2760_v53 = vsub.f32 %v4516_v40, %v2720_v16  ;;  %3699 = vlog2.f32 %v2666_v7 }
 0x8ed   :  { %v3690_v20 = vpop.eup %3689  ;;  %v2757_v30 = vsub.f32 %v4521_v4, %v2714_v22 }
 0x8ee   :  { %v3692_v13 = vpop.eup %3691  ;;  %2792 = vst [vmem:[#allocation14 + $0xb8] sm:$0xff] %v2760_v53  ;;  %v2716_v61 = vmul.f32 0.6931472, %v3690_v20  ;;  %v2668_v34 = vpop.xlane.xlu1 %2667 }
 0x8ef   :  { %2789 = vst [vmem:[#allocation14 + $0xa0] sm:$0xff] %v2757_v30  ;;  %v2726_v35 = vmul.f32 0.6931472, %v3692_v13  ;;  %3701 = vlog2.f32 %v2668_v34  ;;  %v2670_v55 = vpop.xlane.xlu0 %2669 }
 0x8f0   :  { %v2758_v58 = vsub.f32 %v4524_v14, %v2716_v61  ;;  %3703 = vlog2.f32 %v2670_v55 }
 0x8f1   :  { %v3694_v26 = vpop.eup %3693  ;;  %v2763_v18 = vsub.f32 %v4529_v6, %v2726_v35 }
 0x8f2   :  { %v3696_v23 = vpop.eup %3695  ;;  %2790 = vst [vmem:[#allocation14 + $0xa8] sm:$0xff] %v2758_v58  ;;  %v2728_v40 = vmul.f32 0.6931472, %v3694_v26  ;;  %v2672_v36 = vpop.xlane.xlu1 %2671 }
 0x8f3   :  { %2795 = vst [vmem:[#allocation14 + $0xd0] sm:$0xff] %v2763_v18  ;;  %v2722_v4 = vmul.f32 0.6931472, %v3696_v23  ;;  %3705 = vlog2.f32 %v2672_v36 }
 0x8f4   :  { %v2764_v24 = vsub.f32 %v4532_v10, %v2728_v40 }
 0x8f5   :  { %v3698_v17 = vpop.eup %3697  ;;  %v2761_v62 = vsub.f32 %v4537_v11, %v2722_v4 }
 0x8f6   :  { %v3700_v39 = vpop.eup %3699  ;;  %2796 = vst [vmem:[#allocation14 + $0xd8] sm:$0xff] %v2764_v24  ;;  %v2724_v27 = vmul.f32 0.6931472, %v3698_v17 }
 0x8f7   :  { %2793 = vst [vmem:[#allocation14 + $0xc0] sm:$0xff] %v2761_v62  ;;  %v2730_v14 = vmul.f32 0.6931472, %v3700_v39 }
 0x8f8   :  { %v2762_v31 = vsub.f32 %v4540_v12, %v2724_v27 }
 0x8f9   :  { %v3702_v6 = vpop.eup %3701  ;;  %v2765_v33 = vsub.f32 %v4545_v15, %v2730_v14 }
 0x8fa   :  { %v3704_v41 = vpop.eup %3703  ;;  %2794 = vst [vmem:[#allocation14 + $0xc8] sm:$0xff] %v2762_v31  ;;  %v2732_v0 = vmul.f32 0.6931472, %v3702_v6 }
 0x8fb   :  { %2797 = vst [vmem:[#allocation14 + $0xe0] sm:$0xff] %v2765_v33  ;;  %v2734_v51 = vmul.f32 0.6931472, %v3704_v41 }
 0x8fc   :  { %v2766_v10 = vsub.f32 %v4549_v37, %v2732_v0 }
 0x8fd   :  { %v3706_v21 = vpop.eup %3705  ;;  %v2767_v11 = vsub.f32 %v4553_v19, %v2734_v51 }
 0x8fe   :  { %2798 = vst [vmem:[#allocation14 + $0xe8] sm:$0xff] %v2766_v10  ;;  %v2736_v2 = vmul.f32 0.6931472, %v3706_v21 }
 0x8ff   :  { %2799 = vst [vmem:[#allocation14 + $0xf0] sm:$0xff] %v2767_v11 }
 0x900   :  { %v2768_v12 = vsub.f32 %v4557_v42, %v2736_v2 }
 0x902   :  { %2800 = vst [vmem:[#allocation14 + $0xf8] sm:$0xff] %v2768_v12 }
 0x903   :  { %3872 = shalt.err (!%p3869_p4)
}
 0x904   :  { %s3873_s27 = scalar_lea.hbm %s4611_s7, 4096 }
 0x905   :  { %p3874_p5 = scmp.ne.s32.totalorder %s4611_s7, %s3873_s27  ;;  %p3877_p6 = scmp.lt.u32.totalorder %s3873_s27, %s4611_s7 }
 0x907   :  { %p3879_p7 = pnand %p3877_p6, %p3874_p5 }
 0x909   :  { %3882 = shalt.err (!%p3879_p7)
}
 0x90a   :  { %s3905_s21 = smov 128   ;;  %s3906_s22 = smov 8  }
 0x90b   :  { %2812 = dma.vmem_to_hbm [thread:$0]  %s2807_s0, 4096, %s4611_s7, [#allocation4], %s3905_s21, %s3905_s21, %s3906_s22  }
 0x90c   :  { %3891 = dma.done.wait [#allocation4], 4096  }
 0x90d   :  { %3892 = vsyncadd [#allocation4], 4294963200 }
 0x90e   :  { %2816 = vsyncpa [#allocation3], 1 }
 0x90f   :  { %2817 = vsyncpa [#allocation6], 1 }
 0x910   :  { %2818 = vsyncpa [#allocation9], 1 }
 0x911   :  { %2819 = vsyncpa [#allocation12], 1 }
 0x912   :  { %2820 = vsyncpa [#allocation4], 1 }

</bundles_post_ra>
